<compile_context>
chip_gen: v5e
topology: v5e:2x2
jax: 0.10.0
libtpu: 0.0.40
codegen_flags: <defaults>
</compile_context>

<pallas_src>
import functools

import jax
import jax.numpy as jnp
from jax.experimental import pallas as pl
from jax.experimental.pallas import tpu as pltpu


def gcnext_kernel(x_ref,
                  p1_ref, b1_ref, c1_ref,
                  w2s_ref, b2_ref, w3_ref, b3_ref,
                  s2s_ref, c2_ref, s3_ref, c3_ref,
                  not_first_ref, not_last_ref, bid_row_ref, bid_col_ref,
                  o_ref, *, k, mxu_dtype):
    f32 = jnp.float32
    x = x_ref[0]                                   # (C, N) f32, N = Bb*T lane-dense
    C, N = x.shape
    W = b1_ref.shape[0]
    mxu = mxu_dtype

    dn_cc = (((0,), (0,)), ((), ()))               # contract leading dims: A^T B
    dn_rr = (((1,), (1,)), ((), ()))               # contract trailing dims: A B^T

    x_mx = x.astype(mxu)

    # ---- one (3W, C) x (C, N) matmul for the three projections that share RHS x
    h_all = jnp.dot(p1_ref[...], x_mx, preferred_element_type=f32)          # (3W, N)
    h1 = jnp.maximum(h_all[0:W, :] + b1_ref[...], 0.0)                      # tconv1+ReLU
    u = h_all[W:2 * W, :]                                                   # sconv1 neighbor half
    sx = h_all[2 * W:3 * W, :] + c1_ref[...]                                # sconv1 x half

    # ---- temporal branch: grouped conv3(pad=1), taps stacked on output rows,
    #      shifted AFTER the matmul (lane shift commutes with the channel contraction)
    y_all = jnp.dot(w2s_ref[...], h1.astype(mxu), preferred_element_type=f32)   # (3W, N)
    left = pltpu.roll(y_all[0:W, :], 1, 1) * not_first_ref[...]             # tap dt=0 uses t-1
    mid = y_all[W:2 * W, :]                                                 # tap dt=1 uses t
    right = pltpu.roll(y_all[2 * W:3 * W, :], N - 1, 1) * not_last_ref[...] # tap dt=2 uses t+1
    h2 = jnp.maximum(left + mid + right + b2_ref[...], 0.0)                 # (W, N)
    tout = jnp.dot(w3_ref[...], h2.astype(mxu), preferred_element_type=f32) + b3_ref[...]

    # ---- kNN: score[i,j] ranks -||x_i - x_j||^2 within each batch.  Kept in f32
    #      so the discrete selection tracks the reference; the row-constant
    #      -||x_i||^2 and the positive factor 2 cannot change the per-row top-k.
    inner = jax.lax.dot_general(x, x, dn_cc, preferred_element_type=f32)    # (N, N)
    sq = jnp.sum(x * x, axis=0, keepdims=True)                              # (1, N)
    same = bid_col_ref[...] == bid_row_ref[...]                             # in-batch mask (N,N)
    score = jnp.where(same, inner - 0.5 * sq, jnp.float32(-jnp.inf))

    # Pack the score and a smallest-column tie-break into ONE sortable int32 key
    # so each top-k iteration is a single lane reduction (max) + compare, and the
    # resulting selection mask is exactly one-hot per row.  (Only the low
    # ceil(log2(N)) mantissa bits of the score are given up for the tie-break.)
    cbits = max((N - 1).bit_length(), 1)
    low_mask = (1 << cbits) - 1
    bits = pltpu.bitcast(score, jnp.int32)
    sortable = jnp.where(bits >= 0, bits, bits ^ jnp.int32(0x7FFFFFFF))     # monotone f32->i32
    colrev = jnp.int32(N - 1) - jax.lax.broadcasted_iota(jnp.int32, (N, N), 1)
    key = (sortable & jnp.int32(~low_mask)) | colrev                        # unique per row
    int_min = jnp.int32(jnp.iinfo(jnp.int32).min)

    # ---- greedy top-k with the neighbor gather fused INTO the loop:
    #      sconv1's neighbor half is u[:, idx] == u @ sel^T (gather commutes with
    #      the channel projection), so one-hots are never materialized/concatenated.
    u_mx = u.astype(mxu)
    neigh = []
    d = key
    for _ in range(k):
        kmax = jnp.max(d, axis=-1, keepdims=True)                           # (N, 1) single reduce
        sel = d == kmax                                                     # exact one-hot rows
        neigh.append(jax.lax.dot_general(u_mx, sel.astype(mxu), dn_rr,
                                         preferred_element_type=f32))       # (W, N)
        d = jnp.where(sel, int_min, d)                                      # exclude selected

    # ---- spatial branch with all k neighbor slots batched along lanes (kN wide)
    s1_all = jnp.concatenate(
        [jnp.maximum(g + sx, 0.0) for g in neigh], axis=1).astype(mxu)      # (W, kN)
    z_all = jnp.dot(s2s_ref[...], s1_all, preferred_element_type=f32)       # (kW, kN)
    pad = (k - 1) // 2
    s2_cols = []
    for m in range(k):                       # grouped (1,k) conv over the neighbor axis
        acc = None
        for dk in range(k):
            src = m + dk - pad
            if 0 <= src < k:
                term = z_all[dk * W:(dk + 1) * W, src * N:(src + 1) * N]
                acc = term if acc is None else acc + term
        s2_cols.append(jnp.maximum(acc + c2_ref[...], 0.0))
    s2_all = jnp.concatenate(s2_cols, axis=1).astype(mxu)                   # (W, kN)
    s3_all = jnp.dot(s3_ref[...], s2_all, preferred_element_type=f32) + c3_ref[...]  # (C, kN)
    sout = s3_all[:, 0:N]
    for m in range(1, k):                                                   # max over neighbor slots
        sout = jnp.maximum(sout, s3_all[:, m * N:(m + 1) * N])

    out = jnp.maximum(tout + 2.0 * x + sout, 0.0)
    o_ref[0] = out.astype(o_ref.dtype)


def _blockdiag_taps(w, groups):
    """(OutC, InC_per_group, K) grouped conv weight -> (K, OutC, InC) block-diag dense.

    NOTE: dense block-diag inflates MXU MACs by `groups`x.  Fine at toy sizes /
    while the MXU has slack; for production GCNeXt (groups=32, width=128) do the
    taps as per-group small dots on a (groups, cpg, N) reshape instead.
    """
    out_c, in_cpg, K = w.shape
    in_c = in_cpg * groups
    out_cpg = out_c // groups
    full = jnp.zeros((K, out_c, in_c), w.dtype)
    for g in range(groups):
        blk = jnp.transpose(w[g * out_cpg:(g + 1) * out_cpg], (2, 0, 1))    # (K, out_cpg, in_cpg)
        full = full.at[:, g * out_cpg:(g + 1) * out_cpg,
                       g * in_cpg:(g + 1) * in_cpg].set(blk)
    return full


def _pick_block_batch(B, T, lane=128):
    """Smallest divisor Bb of B whose lane width Bb*T reaches `lane` (Bb=1 if T
    already does), preferring an even grid length G = B/Bb so both v7x
    TensorCores stay busy.  Larger Bb only adds masked cross-batch kNN work."""
    if T >= lane:
        return 1
    divs = [bb for bb in range(1, B + 1) if B % bb == 0]
    reach = [bb for bb in divs if bb * T >= lane]
    if not reach:
        return B   # lane dim < 128 but equals the full array extent (still legal)
    even = [bb for bb in reach if (B // bb) % 2 == 0]
    return min(even) if even else min(reach)


def gcnext_block(x, params, *, k=3, groups=4, block_batch=None, mxu_dtype=jnp.bfloat16):
    B, C, T = x.shape
    W = params["tconv2_w"].shape[0]
    Bb = _pick_block_batch(B, T) if block_batch is None else block_batch
    assert B % Bb == 0, "block_batch must divide batch"
    G = B // Bb
    N = Bb * T
    f32 = jnp.float32

    # wrapper-side layout plumbing: (B,C,T) -> (G, C, Bb*T) lane-dense blocks
    x32 = x.astype(f32)
    x2 = x32.reshape(G, Bb, C, T).transpose(0, 2, 1, 3).reshape(G, C, N)

    col = lambda b: b.reshape(-1, 1).astype(f32)
    mx = lambda w: w.astype(mxu_dtype)

    s1w = params["sconv1_w"].astype(f32)
    # tconv1 / sconv1-neighbor / sconv1-x share RHS x -> one stacked (3W, C) weight
    p1 = jnp.concatenate([params["tconv1_w"].astype(f32), s1w[:, :C], s1w[:, C:]], axis=0)

    w2_stack = _blockdiag_taps(params["tconv2_w"].astype(f32), groups).reshape(3 * W, W)
    s2_stack = _blockdiag_taps(params["sconv2_w"].astype(f32), groups).reshape(k * W, W)

    # tiny per-lane metadata instead of an (N,N) HBM-shipped bias
    tpos = jnp.tile(jnp.arange(T, dtype=jnp.int32), Bb)                     # within-batch t
    not_first = (tpos != 0).astype(f32).reshape(1, N)
    not_last = (tpos != T - 1).astype(f32).reshape(1, N)
    bid = jnp.repeat(jnp.arange(Bb, dtype=jnp.int32), T)
    bid_row = bid.reshape(1, N)
    bid_col = bid.reshape(N, 1)

    args = (
        x2,
        mx(p1), col(params["tconv1_b"]), col(params["sconv1_b"]),
        mx(w2_stack), col(params["tconv2_b"]),
        mx(params["tconv3_w"]), col(params["tconv3_b"]),
        mx(s2_stack), col(params["sconv2_b"]),
        mx(params["sconv3_w"]), col(params["sconv3_b"]),
        not_first, not_last, bid_row, bid_col,
    )

    def full_spec(a):
        return pl.BlockSpec(a.shape, lambda g, _nd=a.ndim: (0,) * _nd)

    in_specs = [pl.BlockSpec((1, C, N), lambda g: (g, 0, 0))] + [full_spec(a) for a in args[1:]]

    # advisory cost estimate (matmul MACs dominate)
    flops = 2 * G * (3 * W * C * N            # stacked shared-RHS projections
                     + 3 * W * W * N          # temporal grouped conv taps
                     + C * W * N              # tconv3
                     + N * N * C              # kNN inner product
                     + k * W * N * N          # in-loop neighbor gathers
                     + k * W * W * k * N      # sconv2 taps on (W, kN)
                     + C * W * k * N)         # sconv3 on (W, kN)
    bytes_accessed = int(4 * 2 * x2.size
                         + sum(int(a.size) * a.dtype.itemsize for a in args[1:]))

    kern = functools.partial(gcnext_kernel, k=k, mxu_dtype=mxu_dtype)
    y = pl.pallas_call(
        kern,
        out_shape=jax.ShapeDtypeStruct((G, C, N), jnp.float32),
        grid_spec=pltpu.PrefetchScalarGridSpec(
            num_scalar_prefetch=0,
            grid=(G,),
            in_specs=in_specs,
            out_specs=pl.BlockSpec((1, C, N), lambda g: (g, 0, 0)),
        ),
        compiler_params=pltpu.CompilerParams(
            dimension_semantics=("parallel",),
            vmem_limit_bytes=32 * 1024 * 1024),
        cost_estimate=pl.CostEstimate(flops=flops, transcendentals=0,
                                      bytes_accessed=bytes_accessed),
    )(*args)

    return y.reshape(G, C, Bb, T).transpose(0, 2, 1, 3).reshape(B, C, T)


def init_params(key, channel_in, channel_out, k=3, groups=4, width_group=4):
    width = width_group * groups
    ks = jax.random.split(key, 12)
    n = lambda kk, shape, scale=0.1: (scale * jax.random.normal(kk, shape)).astype(jnp.float32)
    return {
        # temporal branch (Conv1d weights, 1x1 kernels squeezed)
        "tconv1_w": n(ks[0], (width, channel_in)),
        "tconv1_b": n(ks[1], (width,)),
        "tconv2_w": n(ks[2], (width, width // groups, 3)),      # grouped, kernel 3
        "tconv2_b": n(ks[3], (width,)),
        "tconv3_w": n(ks[4], (channel_out, width)),
        "tconv3_b": n(ks[5], (channel_out,)),
        # spatial (graph) branch (Conv2d weights, 1x1 / (1,k) kernels squeezed)
        "sconv1_w": n(ks[6], (width, 2 * channel_in)),
        "sconv1_b": n(ks[7], (width,)),
        "sconv2_w": n(ks[8], (width, width // groups, k)),       # grouped, kernel (1,k)
        "sconv2_b": n(ks[9], (width,)),
        "sconv3_w": n(ks[10], (channel_out, width)),
        "sconv3_b": n(ks[11], (channel_out,)),
    }


if __name__ == "__main__":
    # channel_in == channel_out (required by the residual); Bb auto-picks 4 -> N=128, G=2 (even)
    B, C, T = 8, 16, 32
    k, groups, width_group = 3, 4, 4

    key = jax.random.PRNGKey(0)
    kx, kp = jax.random.split(key)
    x = jax.random.normal(kx, (B, C, T), dtype=jnp.float32)
    params = init_params(kp, C, C, k=k, groups=groups, width_group=width_group)

    out_bf16 = jax.block_until_ready(gcnext_block(x, params, k=k, groups=groups))
    out_f32 = jax.block_until_ready(
        gcnext_block(x, params, k=k, groups=groups, mxu_dtype=jnp.float32))

    assert out_bf16.shape == (B, C, T)
    assert bool(jnp.all(jnp.isfinite(out_bf16)))
    assert bool(jnp.all(jnp.isfinite(out_f32)))
    # kNN selection is f32 in both paths, so only matmul rounding differs
    max_diff = float(jnp.max(jnp.abs(out_bf16 - out_f32)))
    assert max_diff < 0.25, f"bf16/f32 mismatch too large: {max_diff}"
    print("KERNEL_OK")
</pallas_src>

<mosaic_0001>
module attributes {stable_mosaic.version = 11 : i64} {
  func.func @gcnext_kernel(%arg0: i32, %arg1: memref<1x16x128xf32, #tpu.memory_space<vmem>>, %arg2: memref<48x16xbf16, #tpu.memory_space<vmem>>, %arg3: memref<16x1xf32, #tpu.memory_space<vmem>>, %arg4: memref<16x1xf32, #tpu.memory_space<vmem>>, %arg5: memref<48x16xbf16, #tpu.memory_space<vmem>>, %arg6: memref<16x1xf32, #tpu.memory_space<vmem>>, %arg7: memref<16x16xbf16, #tpu.memory_space<vmem>>, %arg8: memref<16x1xf32, #tpu.memory_space<vmem>>, %arg9: memref<48x16xbf16, #tpu.memory_space<vmem>>, %arg10: memref<16x1xf32, #tpu.memory_space<vmem>>, %arg11: memref<16x16xbf16, #tpu.memory_space<vmem>>, %arg12: memref<16x1xf32, #tpu.memory_space<vmem>>, %arg13: memref<1x128xf32, #tpu.memory_space<vmem>>, %arg14: memref<1x128xf32, #tpu.memory_space<vmem>>, %arg15: memref<1x128xi32, #tpu.memory_space<vmem>>, %arg16: memref<128x1xi32, #tpu.memory_space<vmem>>, %arg17: memref<1x16x128xf32, #tpu.memory_space<vmem>>) attributes {dimension_semantics = [#tpu.dimension_semantics<parallel>], iteration_bounds = array<i64: 2>, scalar_prefetch = 0 : i64, scratch_operands = 0 : i64, tpu.core_type = #tpu.core_type<tc>, window_params = [{transform_indices = @transform_0, window_bounds = array<i64: 1, 16, 128>}, {pipeline_mode = #tpu.pipeline_mode<synchronous>, transform_indices = @transform_1, window_bounds = array<i64: 48, 16>}, {pipeline_mode = #tpu.pipeline_mode<synchronous>, transform_indices = @transform_2, window_bounds = array<i64: 16, 1>}, {pipeline_mode = #tpu.pipeline_mode<synchronous>, transform_indices = @transform_3, window_bounds = array<i64: 16, 1>}, {pipeline_mode = #tpu.pipeline_mode<synchronous>, transform_indices = @transform_4, window_bounds = array<i64: 48, 16>}, {pipeline_mode = #tpu.pipeline_mode<synchronous>, transform_indices = @transform_5, window_bounds = array<i64: 16, 1>}, {pipeline_mode = #tpu.pipeline_mode<synchronous>, transform_indices = @transform_6, window_bounds = array<i64: 16, 16>}, {pipeline_mode = #tpu.pipeline_mode<synchronous>, transform_indices = @transform_7, window_bounds = array<i64: 16, 1>}, {pipeline_mode = #tpu.pipeline_mode<synchronous>, transform_indices = @transform_8, window_bounds = array<i64: 48, 16>}, {pipeline_mode = #tpu.pipeline_mode<synchronous>, transform_indices = @transform_9, window_bounds = array<i64: 16, 1>}, {pipeline_mode = #tpu.pipeline_mode<synchronous>, transform_indices = @transform_10, window_bounds = array<i64: 16, 16>}, {pipeline_mode = #tpu.pipeline_mode<synchronous>, transform_indices = @transform_11, window_bounds = array<i64: 16, 1>}, {pipeline_mode = #tpu.pipeline_mode<synchronous>, transform_indices = @transform_12, window_bounds = array<i64: 1, 128>}, {pipeline_mode = #tpu.pipeline_mode<synchronous>, transform_indices = @transform_13, window_bounds = array<i64: 1, 128>}, {pipeline_mode = #tpu.pipeline_mode<synchronous>, transform_indices = @transform_14, window_bounds = array<i64: 1, 128>}, {pipeline_mode = #tpu.pipeline_mode<synchronous>, transform_indices = @transform_15, window_bounds = array<i64: 128, 1>}, {transform_indices = @transform_16, window_bounds = array<i64: 1, 16, 128>}]} {
    %c0 = arith.constant 0 : index
    %c0_0 = arith.constant 0 : index
    %c0_1 = arith.constant 0 : index
    %0 = vector.load %arg1[%c0, %c0_0, %c0_1] : memref<1x16x128xf32, #tpu.memory_space<vmem>>, vector<1x16x128xf32>
    %1 = vector.shape_cast %0 : vector<1x16x128xf32> to vector<16x128xf32>
    %2 = arith.truncf %1 : vector<16x128xf32> to vector<16x128xbf16>
    %c0_2 = arith.constant 0 : index
    %c0_3 = arith.constant 0 : index
    %3 = vector.load %arg2[%c0_2, %c0_3] : memref<48x16xbf16, #tpu.memory_space<vmem>>, vector<48x16xbf16>
    %cst = arith.constant dense<0.000000e+00> : vector<48x128xf32>
    %4 = tpu.matmul %3, %2, %cst {dimension_numbers = #tpu.dot_dimension_numbers<[1], [0], [0], [1], [0, 0, 1, 1], [], []>} : vector<48x16xbf16>, vector<16x128xbf16>, vector<48x128xf32> -> vector<48x128xf32>
    %5 = vector.extract_strided_slice %4 {offsets = [0, 0], sizes = [16, 128], strides = [1, 1]} : vector<48x128xf32> to vector<16x128xf32>
    %c0_4 = arith.constant 0 : index
    %c0_5 = arith.constant 0 : index
    %6 = vector.load %arg3[%c0_4, %c0_5] : memref<16x1xf32, #tpu.memory_space<vmem>>, vector<16x1xf32>
    %7 = vector.broadcast %6 : vector<16x1xf32> to vector<16x128xf32>
    %8 = arith.addf %5, %7 : vector<16x128xf32>
    %cst_6 = arith.constant 0.000000e+00 : f32
    %9 = vector.broadcast %cst_6 : f32 to vector<16x128xf32>
    %10 = arith.maximumf %8, %9 : vector<16x128xf32>
    %11 = vector.extract_strided_slice %4 {offsets = [16, 0], sizes = [16, 128], strides = [1, 1]} : vector<48x128xf32> to vector<16x128xf32>
    %12 = vector.extract_strided_slice %4 {offsets = [32, 0], sizes = [16, 128], strides = [1, 1]} : vector<48x128xf32> to vector<16x128xf32>
    %c0_7 = arith.constant 0 : index
    %c0_8 = arith.constant 0 : index
    %13 = vector.load %arg4[%c0_7, %c0_8] : memref<16x1xf32, #tpu.memory_space<vmem>>, vector<16x1xf32>
    %14 = vector.broadcast %13 : vector<16x1xf32> to vector<16x128xf32>
    %15 = arith.addf %12, %14 : vector<16x128xf32>
    %c0_9 = arith.constant 0 : index
    %c0_10 = arith.constant 0 : index
    %16 = vector.load %arg5[%c0_9, %c0_10] : memref<48x16xbf16, #tpu.memory_space<vmem>>, vector<48x16xbf16>
    %17 = arith.truncf %10 : vector<16x128xf32> to vector<16x128xbf16>
    %cst_11 = arith.constant dense<0.000000e+00> : vector<48x128xf32>
    %18 = tpu.matmul %16, %17, %cst_11 {dimension_numbers = #tpu.dot_dimension_numbers<[1], [0], [0], [1], [0, 0, 1, 1], [], []>} : vector<48x16xbf16>, vector<16x128xbf16>, vector<48x128xf32> -> vector<48x128xf32>
    %19 = vector.extract_strided_slice %18 {offsets = [0, 0], sizes = [16, 128], strides = [1, 1]} : vector<48x128xf32> to vector<16x128xf32>
    %c1_i32 = arith.constant 1 : i32
    %20 = tpu.dynamic_rotate %19 by %c1_i32 dim 1 : vector<16x128xf32>, i32 -> vector<16x128xf32>
    %c0_12 = arith.constant 0 : index
    %c0_13 = arith.constant 0 : index
    %21 = vector.load %arg13[%c0_12, %c0_13] : memref<1x128xf32, #tpu.memory_space<vmem>>, vector<1x128xf32>
    %22 = vector.broadcast %21 : vector<1x128xf32> to vector<16x128xf32>
    %23 = arith.mulf %20, %22 : vector<16x128xf32>
    %24 = vector.extract_strided_slice %18 {offsets = [16, 0], sizes = [16, 128], strides = [1, 1]} : vector<48x128xf32> to vector<16x128xf32>
    %25 = vector.extract_strided_slice %18 {offsets = [32, 0], sizes = [16, 128], strides = [1, 1]} : vector<48x128xf32> to vector<16x128xf32>
    %c127_i32 = arith.constant 127 : i32
    %26 = tpu.dynamic_rotate %25 by %c127_i32 dim 1 : vector<16x128xf32>, i32 -> vector<16x128xf32>
    %c0_14 = arith.constant 0 : index
    %c0_15 = arith.constant 0 : index
    %27 = vector.load %arg14[%c0_14, %c0_15] : memref<1x128xf32, #tpu.memory_space<vmem>>, vector<1x128xf32>
    %28 = vector.broadcast %27 : vector<1x128xf32> to vector<16x128xf32>
    %29 = arith.mulf %26, %28 : vector<16x128xf32>
    %30 = arith.addf %23, %24 : vector<16x128xf32>
    %31 = arith.addf %30, %29 : vector<16x128xf32>
    %c0_16 = arith.constant 0 : index
    %c0_17 = arith.constant 0 : index
    %32 = vector.load %arg6[%c0_16, %c0_17] : memref<16x1xf32, #tpu.memory_space<vmem>>, vector<16x1xf32>
    %33 = vector.broadcast %32 : vector<16x1xf32> to vector<16x128xf32>
    %34 = arith.addf %31, %33 : vector<16x128xf32>
    %cst_18 = arith.constant 0.000000e+00 : f32
    %35 = vector.broadcast %cst_18 : f32 to vector<16x128xf32>
    %36 = arith.maximumf %34, %35 : vector<16x128xf32>
    %c0_19 = arith.constant 0 : index
    %c0_20 = arith.constant 0 : index
    %37 = vector.load %arg7[%c0_19, %c0_20] : memref<16x16xbf16, #tpu.memory_space<vmem>>, vector<16x16xbf16>
    %38 = arith.truncf %36 : vector<16x128xf32> to vector<16x128xbf16>
    %cst_21 = arith.constant dense<0.000000e+00> : vector<16x128xf32>
    %39 = tpu.matmul %37, %38, %cst_21 {dimension_numbers = #tpu.dot_dimension_numbers<[1], [0], [0], [1], [0, 0, 1, 1], [], []>} : vector<16x16xbf16>, vector<16x128xbf16>, vector<16x128xf32> -> vector<16x128xf32>
    %c0_22 = arith.constant 0 : index
    %c0_23 = arith.constant 0 : index
    %40 = vector.load %arg8[%c0_22, %c0_23] : memref<16x1xf32, #tpu.memory_space<vmem>>, vector<16x1xf32>
    %41 = vector.broadcast %40 : vector<16x1xf32> to vector<16x128xf32>
    %42 = arith.addf %39, %41 : vector<16x128xf32>
    %cst_24 = arith.constant dense<0.000000e+00> : vector<128x128xf32>
    %43 = tpu.matmul %1, %1, %cst_24 {dimension_numbers = #tpu.dot_dimension_numbers<[0], [0], [1], [1], [0, 1, 1, 1], [], []>} : vector<16x128xf32>, vector<16x128xf32>, vector<128x128xf32> -> vector<128x128xf32>
    %44 = arith.mulf %1, %1 : vector<16x128xf32>
    %cst_25 = arith.constant dense<0.000000e+00> : vector<128xf32>
    %45 = vector.multi_reduction <add>, %44, %cst_25 [0] : vector<16x128xf32> to vector<128xf32>
    %46 = vector.shape_cast %45 : vector<128xf32> to vector<1x128xf32>
    %c0_26 = arith.constant 0 : index
    %c0_27 = arith.constant 0 : index
    %47 = vector.load %arg16[%c0_26, %c0_27] : memref<128x1xi32, #tpu.memory_space<vmem>>, vector<128x1xi32>
    %c0_28 = arith.constant 0 : index
    %c0_29 = arith.constant 0 : index
    %48 = vector.load %arg15[%c0_28, %c0_29] : memref<1x128xi32, #tpu.memory_space<vmem>>, vector<1x128xi32>
    %49 = vector.broadcast %47 : vector<128x1xi32> to vector<128x128xi32>
    %50 = vector.broadcast %48 : vector<1x128xi32> to vector<128x128xi32>
    %51 = arith.cmpi eq, %49, %50 : vector<128x128xi32>
    %cst_30 = arith.constant 5.000000e-01 : f32
    %52 = vector.broadcast %cst_30 : f32 to vector<1x128xf32>
    %53 = arith.mulf %52, %46 : vector<1x128xf32>
    %54 = vector.broadcast %53 : vector<1x128xf32> to vector<128x128xf32>
    %55 = arith.subf %43, %54 : vector<128x128xf32>
    %cst_31 = arith.constant 0xFF800000 : f32
    %56 = vector.broadcast %cst_31 : f32 to vector<128x128xf32>
    %57 = arith.select %51, %55, %56 : vector<128x128xi1>, vector<128x128xf32>
    %58 = tpu.bitcast %57 : vector<128x128xf32> -> vector<128x128xi32>
    %c0_i32 = arith.constant 0 : i32
    %59 = vector.broadcast %c0_i32 : i32 to vector<128x128xi32>
    %60 = arith.cmpi sge, %58, %59 : vector<128x128xi32>
    %c2147483647_i32 = arith.constant 2147483647 : i32
    %61 = vector.broadcast %c2147483647_i32 : i32 to vector<128x128xi32>
    %62 = arith.xori %58, %61 : vector<128x128xi32>
    %63 = arith.select %60, %58, %62 : vector<128x128xi1>, vector<128x128xi32>
    %64 = tpu.iota {dimensions = array<i32: 1>} : vector<128x128xi32>
    %c127_i32_32 = arith.constant 127 : i32
    %65 = vector.broadcast %c127_i32_32 : i32 to vector<128x128xi32>
    %66 = arith.subi %65, %64 : vector<128x128xi32>
    %c-128_i32 = arith.constant -128 : i32
    %67 = vector.broadcast %c-128_i32 : i32 to vector<128x128xi32>
    %68 = arith.andi %63, %67 : vector<128x128xi32>
    %69 = arith.ori %68, %66 : vector<128x128xi32>
    %70 = arith.truncf %11 : vector<16x128xf32> to vector<16x128xbf16>
    %cst_33 = arith.constant dense<-2147483648> : vector<128xi32>
    %71 = vector.multi_reduction <maxsi>, %69, %cst_33 [1] : vector<128x128xi32> to vector<128xi32>
    %72 = vector.shape_cast %71 : vector<128xi32> to vector<128x1xi32>
    %73 = vector.broadcast %72 : vector<128x1xi32> to vector<128x128xi32>
    %74 = arith.cmpi eq, %69, %73 : vector<128x128xi32>
    %75 = arith.extui %74 : vector<128x128xi1> to vector<128x128xi32>
    %76 = arith.sitofp %75 : vector<128x128xi32> to vector<128x128xf32>
    %77 = arith.truncf %76 : vector<128x128xf32> to vector<128x128xbf16>
    %cst_34 = arith.constant dense<0.000000e+00> : vector<16x128xf32>
    %78 = tpu.matmul %70, %77, %cst_34 {dimension_numbers = #tpu.dot_dimension_numbers<[1], [1], [0], [0], [0, 0, 1, 0], [], []>} : vector<16x128xbf16>, vector<128x128xbf16>, vector<16x128xf32> -> vector<16x128xf32>
    %c-2147483648_i32 = arith.constant -2147483648 : i32
    %79 = vector.broadcast %c-2147483648_i32 : i32 to vector<128x128xi32>
    %80 = arith.select %74, %79, %69 : vector<128x128xi1>, vector<128x128xi32>
    %cst_35 = arith.constant dense<-2147483648> : vector<128xi32>
    %81 = vector.multi_reduction <maxsi>, %80, %cst_35 [1] : vector<128x128xi32> to vector<128xi32>
    %82 = vector.shape_cast %81 : vector<128xi32> to vector<128x1xi32>
    %83 = vector.broadcast %82 : vector<128x1xi32> to vector<128x128xi32>
    %84 = arith.cmpi eq, %80, %83 : vector<128x128xi32>
    %85 = arith.extui %84 : vector<128x128xi1> to vector<128x128xi32>
    %86 = arith.sitofp %85 : vector<128x128xi32> to vector<128x128xf32>
    %87 = arith.truncf %86 : vector<128x128xf32> to vector<128x128xbf16>
    %cst_36 = arith.constant dense<0.000000e+00> : vector<16x128xf32>
    %88 = tpu.matmul %70, %87, %cst_36 {dimension_numbers = #tpu.dot_dimension_numbers<[1], [1], [0], [0], [0, 0, 1, 0], [], []>} : vector<16x128xbf16>, vector<128x128xbf16>, vector<16x128xf32> -> vector<16x128xf32>
    %c-2147483648_i32_37 = arith.constant -2147483648 : i32
    %89 = vector.broadcast %c-2147483648_i32_37 : i32 to vector<128x128xi32>
    %90 = arith.select %84, %89, %80 : vector<128x128xi1>, vector<128x128xi32>
    %cst_38 = arith.constant dense<-2147483648> : vector<128xi32>
    %91 = vector.multi_reduction <maxsi>, %90, %cst_38 [1] : vector<128x128xi32> to vector<128xi32>
    %92 = vector.shape_cast %91 : vector<128xi32> to vector<128x1xi32>
    %93 = vector.broadcast %92 : vector<128x1xi32> to vector<128x128xi32>
    %94 = arith.cmpi eq, %90, %93 : vector<128x128xi32>
    %95 = arith.extui %94 : vector<128x128xi1> to vector<128x128xi32>
    %96 = arith.sitofp %95 : vector<128x128xi32> to vector<128x128xf32>
    %97 = arith.truncf %96 : vector<128x128xf32> to vector<128x128xbf16>
    %cst_39 = arith.constant dense<0.000000e+00> : vector<16x128xf32>
    %98 = tpu.matmul %70, %97, %cst_39 {dimension_numbers = #tpu.dot_dimension_numbers<[1], [1], [0], [0], [0, 0, 1, 0], [], []>} : vector<16x128xbf16>, vector<128x128xbf16>, vector<16x128xf32> -> vector<16x128xf32>
    %99 = arith.addf %78, %15 : vector<16x128xf32>
    %cst_40 = arith.constant 0.000000e+00 : f32
    %100 = vector.broadcast %cst_40 : f32 to vector<16x128xf32>
    %101 = arith.maximumf %99, %100 : vector<16x128xf32>
    %102 = arith.addf %88, %15 : vector<16x128xf32>
    %cst_41 = arith.constant 0.000000e+00 : f32
    %103 = vector.broadcast %cst_41 : f32 to vector<16x128xf32>
    %104 = arith.maximumf %102, %103 : vector<16x128xf32>
    %105 = arith.addf %98, %15 : vector<16x128xf32>
    %cst_42 = arith.constant 0.000000e+00 : f32
    %106 = vector.broadcast %cst_42 : f32 to vector<16x128xf32>
    %107 = arith.maximumf %105, %106 : vector<16x128xf32>
    %108 = tpu.concatenate %101, %104, %107 in 1 : vector<16x128xf32>, vector<16x128xf32>, vector<16x128xf32> -> vector<16x384xf32>
    %109 = arith.truncf %108 : vector<16x384xf32> to vector<16x384xbf16>
    %c0_43 = arith.constant 0 : index
    %c0_44 = arith.constant 0 : index
    %110 = vector.load %arg9[%c0_43, %c0_44] : memref<48x16xbf16, #tpu.memory_space<vmem>>, vector<48x16xbf16>
    %cst_45 = arith.constant dense<0.000000e+00> : vector<48x384xf32>
    %111 = tpu.matmul %110, %109, %cst_45 {dimension_numbers = #tpu.dot_dimension_numbers<[1], [0], [0], [1], [0, 0, 1, 1], [], []>} : vector<48x16xbf16>, vector<16x384xbf16>, vector<48x384xf32> -> vector<48x384xf32>
    %112 = vector.extract_strided_slice %111 {offsets = [16, 0], sizes = [16, 128], strides = [1, 1]} : vector<48x384xf32> to vector<16x128xf32>
    %113 = vector.extract_strided_slice %111 {offsets = [32, 128], sizes = [16, 128], strides = [1, 1]} : vector<48x384xf32> to vector<16x128xf32>
    %114 = arith.addf %112, %113 : vector<16x128xf32>
    %c0_46 = arith.constant 0 : index
    %c0_47 = arith.constant 0 : index
    %115 = vector.load %arg10[%c0_46, %c0_47] : memref<16x1xf32, #tpu.memory_space<vmem>>, vector<16x1xf32>
    %116 = vector.broadcast %115 : vector<16x1xf32> to vector<16x128xf32>
    %117 = arith.addf %114, %116 : vector<16x128xf32>
    %cst_48 = arith.constant 0.000000e+00 : f32
    %118 = vector.broadcast %cst_48 : f32 to vector<16x128xf32>
    %119 = arith.maximumf %117, %118 : vector<16x128xf32>
    %120 = vector.extract_strided_slice %111 {offsets = [0, 0], sizes = [16, 128], strides = [1, 1]} : vector<48x384xf32> to vector<16x128xf32>
    %121 = vector.extract_strided_slice %111 {offsets = [16, 128], sizes = [16, 128], strides = [1, 1]} : vector<48x384xf32> to vector<16x128xf32>
    %122 = arith.addf %120, %121 : vector<16x128xf32>
    %123 = vector.extract_strided_slice %111 {offsets = [32, 256], sizes = [16, 128], strides = [1, 1]} : vector<48x384xf32> to vector<16x128xf32>
    %124 = arith.addf %122, %123 : vector<16x128xf32>
    %c0_49 = arith.constant 0 : index
    %c0_50 = arith.constant 0 : index
    %125 = vector.load %arg10[%c0_49, %c0_50] : memref<16x1xf32, #tpu.memory_space<vmem>>, vector<16x1xf32>
    %126 = vector.broadcast %125 : vector<16x1xf32> to vector<16x128xf32>
    %127 = arith.addf %124, %126 : vector<16x128xf32>
    %cst_51 = arith.constant 0.000000e+00 : f32
    %128 = vector.broadcast %cst_51 : f32 to vector<16x128xf32>
    %129 = arith.maximumf %127, %128 : vector<16x128xf32>
    %130 = vector.extract_strided_slice %111 {offsets = [0, 128], sizes = [16, 128], strides = [1, 1]} : vector<48x384xf32> to vector<16x128xf32>
    %131 = vector.extract_strided_slice %111 {offsets = [16, 256], sizes = [16, 128], strides = [1, 1]} : vector<48x384xf32> to vector<16x128xf32>
    %132 = arith.addf %130, %131 : vector<16x128xf32>
    %c0_52 = arith.constant 0 : index
    %c0_53 = arith.constant 0 : index
    %133 = vector.load %arg10[%c0_52, %c0_53] : memref<16x1xf32, #tpu.memory_space<vmem>>, vector<16x1xf32>
    %134 = vector.broadcast %133 : vector<16x1xf32> to vector<16x128xf32>
    %135 = arith.addf %132, %134 : vector<16x128xf32>
    %cst_54 = arith.constant 0.000000e+00 : f32
    %136 = vector.broadcast %cst_54 : f32 to vector<16x128xf32>
    %137 = arith.maximumf %135, %136 : vector<16x128xf32>
    %138 = tpu.concatenate %119, %129, %137 in 1 : vector<16x128xf32>, vector<16x128xf32>, vector<16x128xf32> -> vector<16x384xf32>
    %139 = arith.truncf %138 : vector<16x384xf32> to vector<16x384xbf16>
    %c0_55 = arith.constant 0 : index
    %c0_56 = arith.constant 0 : index
    %140 = vector.load %arg11[%c0_55, %c0_56] : memref<16x16xbf16, #tpu.memory_space<vmem>>, vector<16x16xbf16>
    %cst_57 = arith.constant dense<0.000000e+00> : vector<16x384xf32>
    %141 = tpu.matmul %140, %139, %cst_57 {dimension_numbers = #tpu.dot_dimension_numbers<[1], [0], [0], [1], [0, 0, 1, 1], [], []>} : vector<16x16xbf16>, vector<16x384xbf16>, vector<16x384xf32> -> vector<16x384xf32>
    %c0_58 = arith.constant 0 : index
    %c0_59 = arith.constant 0 : index
    %142 = vector.load %arg12[%c0_58, %c0_59] : memref<16x1xf32, #tpu.memory_space<vmem>>, vector<16x1xf32>
    %143 = vector.broadcast %142 : vector<16x1xf32> to vector<16x384xf32>
    %144 = arith.addf %141, %143 : vector<16x384xf32>
    %145 = vector.extract_strided_slice %144 {offsets = [0, 0], sizes = [16, 128], strides = [1, 1]} : vector<16x384xf32> to vector<16x128xf32>
    %146 = vector.extract_strided_slice %144 {offsets = [0, 128], sizes = [16, 128], strides = [1, 1]} : vector<16x384xf32> to vector<16x128xf32>
    %147 = arith.maximumf %145, %146 : vector<16x128xf32>
    %148 = vector.extract_strided_slice %144 {offsets = [0, 256], sizes = [16, 128], strides = [1, 1]} : vector<16x384xf32> to vector<16x128xf32>
    %149 = arith.maximumf %147, %148 : vector<16x128xf32>
    %cst_60 = arith.constant 2.000000e+00 : f32
    %150 = vector.broadcast %cst_60 : f32 to vector<16x128xf32>
    %151 = arith.mulf %150, %1 : vector<16x128xf32>
    %152 = arith.addf %42, %151 : vector<16x128xf32>
    %153 = arith.addf %152, %149 : vector<16x128xf32>
    %cst_61 = arith.constant 0.000000e+00 : f32
    %154 = vector.broadcast %cst_61 : f32 to vector<16x128xf32>
    %155 = arith.maximumf %153, %154 : vector<16x128xf32>
    %c0_62 = arith.constant 0 : index
    %c0_63 = arith.constant 0 : index
    %c0_64 = arith.constant 0 : index
    %156 = vector.load %arg17[%c0_62, %c0_63, %c0_64] : memref<1x16x128xf32, #tpu.memory_space<vmem>>, vector<1x16x128xf32>
    %157 = vector.shape_cast %156 : vector<1x16x128xf32> to vector<16x128xf32>
    %158 = vector.shape_cast %155 : vector<16x128xf32> to vector<1x16x128xf32>
    tpu.vector_store %arg17[%c0_62, %c0_63, %c0_64], %158 {strides = array<i32>} : memref<1x16x128xf32, #tpu.memory_space<vmem>>, vector<1x16x128xf32>,
    return
  }
  func.func @transform_0(%arg0: i32) -> (i32, i32, i32) {
    %c0_i32 = arith.constant 0 : i32
    %c0_i32_0 = arith.constant 0 : i32
    %c0_i32_1 = arith.constant 0 : i32
    return %arg0, %c0_i32, %c0_i32_0 : i32, i32, i32
  }
  func.func @transform_1(%arg0: i32) -> (i32, i32) {
    %c0_i32 = arith.constant 0 : i32
    %c0_i32_0 = arith.constant 0 : i32
    %c0_i32_1 = arith.constant 0 : i32
    return %c0_i32, %c0_i32_0 : i32, i32
  }
  func.func @transform_2(%arg0: i32) -> (i32, i32) {
    %c0_i32 = arith.constant 0 : i32
    %c0_i32_0 = arith.constant 0 : i32
    %c0_i32_1 = arith.constant 0 : i32
    return %c0_i32, %c0_i32_0 : i32, i32
  }
  func.func @transform_3(%arg0: i32) -> (i32, i32) {
    %c0_i32 = arith.constant 0 : i32
    %c0_i32_0 = arith.constant 0 : i32
    %c0_i32_1 = arith.constant 0 : i32
    return %c0_i32, %c0_i32_0 : i32, i32
  }
  func.func @transform_4(%arg0: i32) -> (i32, i32) {
    %c0_i32 = arith.constant 0 : i32
    %c0_i32_0 = arith.constant 0 : i32
    %c0_i32_1 = arith.constant 0 : i32
    return %c0_i32, %c0_i32_0 : i32, i32
  }
  func.func @transform_5(%arg0: i32) -> (i32, i32) {
    %c0_i32 = arith.constant 0 : i32
    %c0_i32_0 = arith.constant 0 : i32
    %c0_i32_1 = arith.constant 0 : i32
    return %c0_i32, %c0_i32_0 : i32, i32
  }
  func.func @transform_6(%arg0: i32) -> (i32, i32) {
    %c0_i32 = arith.constant 0 : i32
    %c0_i32_0 = arith.constant 0 : i32
    %c0_i32_1 = arith.constant 0 : i32
    return %c0_i32, %c0_i32_0 : i32, i32
  }
  func.func @transform_7(%arg0: i32) -> (i32, i32) {
    %c0_i32 = arith.constant 0 : i32
    %c0_i32_0 = arith.constant 0 : i32
    %c0_i32_1 = arith.constant 0 : i32
    return %c0_i32, %c0_i32_0 : i32, i32
  }
  func.func @transform_8(%arg0: i32) -> (i32, i32) {
    %c0_i32 = arith.constant 0 : i32
    %c0_i32_0 = arith.constant 0 : i32
    %c0_i32_1 = arith.constant 0 : i32
    return %c0_i32, %c0_i32_0 : i32, i32
  }
  func.func @transform_9(%arg0: i32) -> (i32, i32) {
    %c0_i32 = arith.constant 0 : i32
    %c0_i32_0 = arith.constant 0 : i32
    %c0_i32_1 = arith.constant 0 : i32
    return %c0_i32, %c0_i32_0 : i32, i32
  }
  func.func @transform_10(%arg0: i32) -> (i32, i32) {
    %c0_i32 = arith.constant 0 : i32
    %c0_i32_0 = arith.constant 0 : i32
    %c0_i32_1 = arith.constant 0 : i32
    return %c0_i32, %c0_i32_0 : i32, i32
  }
  func.func @transform_11(%arg0: i32) -> (i32, i32) {
    %c0_i32 = arith.constant 0 : i32
    %c0_i32_0 = arith.constant 0 : i32
    %c0_i32_1 = arith.constant 0 : i32
    return %c0_i32, %c0_i32_0 : i32, i32
  }
  func.func @transform_12(%arg0: i32) -> (i32, i32) {
    %c0_i32 = arith.constant 0 : i32
    %c0_i32_0 = arith.constant 0 : i32
    %c0_i32_1 = arith.constant 0 : i32
    return %c0_i32, %c0_i32_0 : i32, i32
  }
  func.func @transform_13(%arg0: i32) -> (i32, i32) {
    %c0_i32 = arith.constant 0 : i32
    %c0_i32_0 = arith.constant 0 : i32
    %c0_i32_1 = arith.constant 0 : i32
    return %c0_i32, %c0_i32_0 : i32, i32
  }
  func.func @transform_14(%arg0: i32) -> (i32, i32) {
    %c0_i32 = arith.constant 0 : i32
    %c0_i32_0 = arith.constant 0 : i32
    %c0_i32_1 = arith.constant 0 : i32
    return %c0_i32, %c0_i32_0 : i32, i32
  }
  func.func @transform_15(%arg0: i32) -> (i32, i32) {
    %c0_i32 = arith.constant 0 : i32
    %c0_i32_0 = arith.constant 0 : i32
    %c0_i32_1 = arith.constant 0 : i32
    return %c0_i32, %c0_i32_0 : i32, i32
  }
  func.func @transform_16(%arg0: i32) -> (i32, i32, i32) {
    %c0_i32 = arith.constant 0 : i32
    %c0_i32_0 = arith.constant 0 : i32
    %c0_i32_1 = arith.constant 0 : i32
    return %arg0, %c0_i32, %c0_i32_0 : i32, i32, i32
  }
}

</mosaic_0001>

<bundles_post_ra>
// kernel: tpu_custom_call.1
= control target key start
LH: loop header
LB: loop body
LE: loop exit
PB: predicated region body
PF: predicated region fallthrough
CT: control target
= control target key end

     0   :  { %s4050_s0 = inlined_call_operand.vmem [shape: f32[2,16,128], index: 0, kind: input, shape index: {}]   ;;  %s4051_s1 = inlined_call_operand.vmem [shape: bf16[48,16], index: 1, kind: input, shape index: {}]   ;;  %s4052_s2 = inlined_call_operand.vmem [shape: f32[16,1], index: 2, kind: input, shape index: {}]   ;;  %s4053_s3 = inlined_call_operand.vmem [shape: f32[16,1], index: 3, kind: input, shape index: {}]   ;;  %s4054_s4 = inlined_call_operand.vmem [shape: bf16[48,16], index: 4, kind: input, shape index: {}]   ;;  %s4055_s5 = inlined_call_operand.vmem [shape: f32[16,1], index: 5, kind: input, shape index: {}]   ;;  %s4056_s6 = inlined_call_operand.vmem [shape: bf16[16,16], index: 6, kind: input, shape index: {}]   ;;  %s4057_s7 = inlined_call_operand.vmem [shape: f32[16,1], index: 7, kind: input, shape index: {}]   ;;  %s4058_s8 = inlined_call_operand.vmem [shape: bf16[48,16], index: 8, kind: input, shape index: {}]   ;;  %s4059_s9 = inlined_call_operand.vmem [shape: f32[16,1], index: 9, kind: input, shape index: {}]   ;;  %s4060_s10 = inlined_call_operand.vmem [shape: bf16[16,16], index: 10, kind: input, shape index: {}]   ;;  %s4061_s11 = inlined_call_operand.vmem [shape: f32[16,1], index: 11, kind: input, shape index: {}]   ;;  %s4062_s12 = inlined_call_operand.vmem [shape: f32[1,128], index: 12, kind: input, shape index: {}]   ;;  %s4063_s13 = inlined_call_operand.vmem [shape: f32[1,128], index: 13, kind: input, shape index: {}]   ;;  %s4064_s14 = inlined_call_operand.vmem [shape: s32[1,128], index: 14, kind: input, shape index: {}]   ;;  %s4065_s15 = inlined_call_operand.vmem [shape: s32[128,1], index: 15, kind: input, shape index: {}]   ;;  %s4066_s16 = inlined_call_operand.hbm [shape: f32[2,16,128], index: 16, kind: output, shape index: {}]  }
   0x1   :  { %4072 = sst [smem:[#allocation10_spill]] %s4050_s0 }
   0x2   :  { %4073 = sst [smem:[#allocation11_spill]] %s4051_s1 }
   0x3   :  { %4074 = sst [smem:[#allocation12_spill]] %s4052_s2 }
   0x4   :  { %21 = vsyncpa [#allocation3], 0 }
   0x5   :  { %23 = vsyncpa [#allocation3 + $0x1], 0  ;;  %s2731_s21 = smov 0   ;;  %s2733_s22 = smov 0  }
   0x6   :  { %s2735_s23 = smov 0   ;;  %s2737_s24 = smov 0  }
   0x7 LB: > { %4075 = sst [smem:[#allocation5_spill]] %s2626_s21  ;;  %s2752_s25 = sadd.s32 4294967295, %s2638_s24   ;;  %s2638_s24 = sphi %s2737_s24, %s4121_s24   ;;  %s2634_s23 = sphi %s2735_s23, %s4123_s23   ;;  %s2630_s22 = sphi %s2733_s22, %s4125_s22   ;;  %s2626_s21 = sphi %s2731_s21, %s4124_s21  }
   0x8   : > { %4076 = sst [smem:[#allocation6_spill]] %s2634_s23  ;;  %s2322_s26 = sadd.s32 4294967294, %s2638_s24  }
   0x9   : > { %s2756_s27 = sadd.s32 1, %s2638_s24   ;;  %s377_s28 = sadd.s32 1, %s2634_s23 }
   0xa   : > { %4077 = sst [smem:[#allocation7_spill]] %s2756_s27  ;;  %s374_s29 = ssub.s32 %s2638_s24, %s2756_s27 }
   0xb   : > { %p387_p0 = scmp.ne.s32.totalorder %s2634_s23, %s2630_s22  ;;  %p375_p1 = scmp.eq.s32.totalorder %s374_s29, 0 }
   0xc   : > { %p388_p2 = scmp.eq.s32.totalorder %s2752_s25, 1  ;;  %p393_p3 = scmp.ne.s32.totalorder %s2630_s22, %s2626_s21 }
   0xd   : > { %p394_p4 = scmp.eq.s32.totalorder %s2322_s26, 1  ;;  %p2325_p7 = scmp.ge.s32.totalorder %s2638_s24, 1 }
   0xe   : > { %s2767_s30 = scalar_select %p375_p1, %s2634_s23, %s377_s28  }
   0xf   : > { %p2769_p5 = por %p388_p2, %p387_p0  ;;  %p2773_p6 = por %p394_p4, %p393_p3 }
  0x10   : > { %4078 = sst [smem:[#allocation8_spill]] %s2767_s30  ;;  %p465_p8 = scmp.lt.s32.totalorder %s2638_s24, 3 }
  0x11   : > { %s4080_s17 = scalar_select %p2773_p6, 1, 0 }
  0x12   : > { %p466_p9 = pnand %p2325_p7, %p465_p8 }
  0x13   : > { %4081 = sst [smem:[#allocation9_spill]] %s4080_s17  ;;  %p515_p10 = scmp.lt.s32.totalorder (!%p466_p9), %s2752_s25, 1 }
  0x14   : > { %469 = sbr.rel (%p466_p9) target bundleno = 1882 (0x75a), region = 84  ;;  %s4082_s27 = sld [smem:[#allocation10_spill]] (!%p466_p9) }
  0x15   : > { %s4083_s1 = sld [smem:[#allocation11_spill]] (!%p466_p9)  ;;  %s2521_s30 = sshll.u32 (!%p466_p9), %s2752_s25, 4 }
  0x16   : > { %s4084_s2 = sld [smem:[#allocation12_spill]] (!%p466_p9)  ;;  %s2596_s20 = scalar_lea.hbm (!%p466_p9), %s4066_s16, 32 }
  0x19   : > { %v909_v0 = vld [vmem:[%s4065_s15 + $0x70] sm:$0xff]  ;;  %v2640_v1 = vmov 0   ;;  %v907_v2 = vld [vmem:[%s4065_s15 + $0x60] sm:$0xff]  ;;  %s516_s28 = scalar_select %p515_p10, %s2752_s25, 1  ;;  %v910_v5 = vld [vmem:[%s4065_s15 + $0x78] sm:$0xff]  ;;  %vm545_vm0 = vcmask 130048  }
  0x1a   : > { %2568 = vset.pattern.permute.xlu1 %v2640_v1  ;;  %2569 = vset.pattern.permute.xlu2 %v2640_v1  ;;  %v906_v6 = vld [vmem:[%s4065_s15 + $0x58] sm:$0xff]  ;;  %v904_v7 = vld [vmem:[%s4065_s15 + $0x48] sm:$0xff]  ;;  %v903_v10 = vld [vmem:[%s4065_s15 + $0x40] sm:$0xff] }
  0x1b   : > { %955 = vperm.xlu1 %2568, %v909_v0   ;;  %949 = vperm.xlu2 %2569, %v907_v2   ;;  %s2509_s29 = sshll.u32 %s516_s28, 4  ;;  %v908_v8 = vld [vmem:[%s4065_s15 + $0x68] sm:$0xff]  ;;  %v902_v9 = vld [vmem:[%s4065_s15 + $0x38] sm:$0xff]  ;;  %v2510_v13 = vld [vmem:[%s4083_s1] sm:$0xff]  ;;  %s2643_s28 = smov 127  }
  0x1c   : > { %s2790_s17 = scalar_lea.vmem %s4082_s27, %s2509_s29  ;;  %v900_v11 = vld [vmem:[%s4065_s15 + $0x28] sm:$0xff]  ;;  %v901_v14 = vld [vmem:[%s4065_s15 + $0x30] sm:$0xff]  ;;  %v898_v15 = vld [vmem:[%s4065_s15 + $0x18] sm:$0xff]  ;;  %s2641_s29 = smov 1  }
  0x1d   : > { %v2793_v3 = vld [vmem:[%s2790_s17] sm:$0xff]  ;;  %v2796_v4 = vld [vmem:[%s2790_s17 + $0x8] sm:$0xff]  ;;  %v897_v19 = vld [vmem:[%s4065_s15 + $0x10] sm:$0xff] }
  0x1e   : > { %741 = vxpose.xlu0.b32.start [1/2] (short) %v2793_v3, 128  ;;  %835 = vmatpush.msra.mxu3 %v2796_v4  ;;  %v523_v12 = vpack.c.bf16 %v2796_v4, %v2793_v3  ;;  %v899_v16 = vld [vmem:[%s4065_s15 + $0x20] sm:$0xff]  ;;  %v896_v17 = vld [vmem:[%s4065_s15 + $0x8] sm:$0xff]  ;;  %v905_v35 = vld [vmem:[%s4065_s15 + $0x50] sm:$0xff]  ;;  %v886_v47 = vmul.f32 %v2793_v3, %v2793_v3  ;;  %v887_v48 = vmul.f32 %v2796_v4, %v2796_v4 }
  0x1f   : > { %v579_v20 = vld [vmem:[%s4084_s2] sm:$0xff]  ;;  %v580_v25 = vld [vmem:[%s4084_s2 + $0x8] sm:$0xff] }
  0x20   : > { %836 = vmatpush.msra.mxu3 %v2793_v3  ;;  %562 = vmatpush.bf16.msra.mxu0 %v523_v12  ;;  %v895_v22 = vld [vmem:[%s4065_s15] sm:$0xff]  ;;  %v888_v50 = vadd.f32 %v887_v48, %v886_v47 }
  0x22   : > { %v889_v53 = vrot.slane %v888_v50, 4 }
  0x23   : > { %958 = vperm.xlu1 %2568, %v910_v5   ;;  %952 = vperm.xlu2 %2569, %v908_v8   ;;  %v2903_v8 = vld [vmem:[%s4064_s14] ss:$0 sm:$0xff] }
  0x24   : > { %2341 = vmatmul.msk.bf16.vlgmr.msra.gmra.mxu0 %vm545_vm0, %v2510_v13  ;;  %v890_v55 = vadd.f32 %v889_v53, %v888_v50 }
  0x26   : > { %742 = vxpose.xlu0.b32.end [2/2] (short) %v2796_v4, 128  ;;  %v891_v59 = vrot.slane %v890_v55, 2 }
  0x28   : > { %v892_v60 = vadd.f32 %v891_v59, %v890_v55 }
  0x2a   : > { %v893_v4 = vrot.slane %v892_v60, 1 }
  0x2b   : > { %946 = vperm.xlu1 %2568, %v906_v6   ;;  %937 = vperm.xlu2 %2569, %v903_v10   ;;  %v1074_v10 = vlaneseq }
  0x2d   : > { %v1075_v13 = vand.u32 127, %v1074_v10 }
  0x33   : > { %940 = vperm.xlu1 %2568, %v904_v7   ;;  %931 = vperm.xlu2 %2569, %v901_v14   ;;  %v894_v7 = vadd.f32 %v893_v4, %v892_v60 }
  0x3b   : > { %934 = vperm.xlu1 %2568, %v902_v9   ;;  %925 = vperm.xlu2 %2569, %v899_v16   ;;  %v2905_v9 = vmul.f32 0.5, %v894_v7  ;;  %v2909_v16 = vsub.s32 127, %v1075_v13 }
  0x43   : > { %928 = vperm.xlu1 %2568, %v900_v11   ;;  %919 = vperm.xlu2 %2569, %v897_v19  }
  0x4b   : > { %922 = vperm.xlu1 %2568, %v898_v15   ;;  %913 = vperm.xlu2 %2569, %v895_v22  }
  0x53   : > { %916 = vperm.xlu1 %2568, %v896_v17   ;;  %588 = vperm.xlu2 %2569, %v580_v25  }
  0x5b   : > { %583 = vperm.xlu1 %2568, %v579_v20  }
  0x75   : > { %v2862_v30 = vpop.permute.xlu2 %949 }
  0x7d   : > { %v2867_v33 = vpop.permute.xlu2 %952 }
  0x85   : > { %v2875_v37 = vpop.permute.xlu2 %937 }
  0x8d   : > { %2570 = vset.pattern.permute.xlu0 %v2640_v1  ;;  %v2860_v29 = vpop.permute.xlu1 %955  ;;  %v2880_v40 = vpop.permute.xlu2 %931 }
  0x8e   : > { %vm967_vm13 = vcmp.eq.s32.totalorder %v2880_v40, %v2903_v8 }
  0x95   : > { %v2865_v32 = vpop.permute.xlu1 %958  ;;  %v2885_v44 = vpop.permute.xlu2 %925 }
  0x96   : > { %vm965_vm9 = vcmp.eq.s32.totalorder %v2885_v44, %v2903_v8 }
  0x9d   : > { %v2873_v36 = vpop.permute.xlu1 %946  ;;  %v920_v49 = vpop.permute.xlu2 %919 }
  0x9e   : > { %vm963_vm5 = vcmp.eq.s32.totalorder %v920_v49, %v2903_v8 }
  0xa1   : > { %v564_v57 = vpop.f32.mrf.mxu0 }
  0xa5   : > { %v2878_v39 = vpop.permute.xlu1 %940  ;;  %v914_v54 = vpop.permute.xlu2 %913 }
  0xa6   : > { %vm961_vm1 = vcmp.eq.s32.totalorder %v914_v54, %v2903_v8 }
  0xa9   : > { %v566_v0 = vpop.f32.mrf.mxu0 }
  0xad   : > { %v2883_v42 = vpop.permute.xlu1 %934  ;;  %v589_v61 = vpop.permute.xlu2 %588 }
  0xae   : > { %v592_v1 = vadd.f32 %v589_v61, %v566_v0  ;;  %vm968_vm15 = vcmp.eq.s32.totalorder %v2883_v42, %v2903_v8 }
  0xb0   : > { %v594_v5 = vmax.f32 %v592_v1, 0.0 }
  0xb5   : > { %v2888_v45 = vpop.permute.xlu1 %928 }
  0xb6   : > { %vm966_vm11 = vcmp.eq.s32.totalorder %v2888_v45, %v2903_v8 }
  0xbd   : > { %v2895_v51 = vpop.permute.xlu1 %922 }
  0xbe   : > { %vm964_vm7 = vcmp.eq.s32.totalorder %v2895_v51, %v2903_v8 }
  0xc2   : > { %v757_v18 = vpop.trf.xlu0 }
  0xc3   : > { %2364 = vmatmul.msk.f32.vlgmr.msra.gmra.mxu3 %vm545_vm0, %v757_v18 }
  0xc5   : > { %v917_v56 = vpop.permute.xlu1 %916 }
  0xc6   : > { %vm962_vm3 = vcmp.eq.s32.totalorder %v917_v56, %v2903_v8 }
  0xca   : > { %v758_v21 = vpop.trf.xlu0 }
  0xcb   : > { %2365 = vmatmul.msk.f32.gmra.mxu3 %vm545_vm0, %v758_v21 }
  0xcd   : > { %v584_v62 = vpop.permute.xlu1 %583 }
  0xce   : > { %v591_v63 = vadd.f32 %v584_v62, %v564_v57 }
  0xd0   : > { %v593_v3 = vmax.f32 %v591_v63, 0.0 }
  0xd2   : > { %v759_v23 = vpop.trf.xlu0  ;;  %v615_v6 = vpack.c.bf16 %v594_v5, %v593_v3 }
  0xd3   : > { %2366 = vmatmul.msk.f32.gmra.mxu3 %vm545_vm0, %v759_v23 }
  0xd4   : > { %647 = vmatpush.bf16.msra.mxu1 %v615_v6 }
  0xda   : > { %v760_v24 = vpop.trf.xlu0 }
  0xdb   : > { %2367 = vmatmul.msk.f32.gmra.mxu3 %vm545_vm0, %v760_v24 }
  0xe2   : > { %v761_v26 = vpop.trf.xlu0 }
  0xe3   : > { %2368 = vmatmul.msk.f32.gmra.mxu3 %vm545_vm0, %v761_v26 }
  0xea   : > { %v762_v27 = vpop.trf.xlu0 }
  0xeb   : > { %2369 = vmatmul.msk.f32.gmra.mxu3 %vm545_vm0, %v762_v27 }
  0xf2   : > { %v763_v28 = vpop.trf.xlu0 }
  0xf3   : > { %2370 = vmatmul.msk.f32.gmra.mxu3 %vm545_vm0, %v763_v28 }
  0xfa   : > { %v764_v31 = vpop.trf.xlu0 }
  0xfb   : > { %2371 = vmatmul.msk.f32.gmra.mxu3 %vm545_vm0, %v764_v31 }
 0x102   : > { %v765_v34 = vpop.trf.xlu0 }
 0x103   : > { %2372 = vmatmul.msk.f32.gmra.mxu3 %vm545_vm0, %v765_v34 }
 0x104   : > { %943 = vperm.xlu0 %2570, %v905_v35  }
 0x10a   : > { %v766_v38 = vpop.trf.xlu0 }
 0x10b   : > { %2373 = vmatmul.msk.f32.gmra.mxu3 %vm545_vm0, %v766_v38 }
 0x112   : > { %v767_v41 = vpop.trf.xlu0 }
 0x113   : > { %2374 = vmatmul.msk.f32.gmra.mxu3 %vm545_vm0, %v767_v41 }
 0x11a   : > { %v768_v43 = vpop.trf.xlu0 }
 0x11b   : > { %2375 = vmatmul.msk.f32.gmra.mxu3 %vm545_vm0, %v768_v43 }
 0x122   : > { %v769_v46 = vpop.trf.xlu0 }
 0x123   : > { %2376 = vmatmul.msk.f32.gmra.mxu3 %vm545_vm0, %v769_v46 }
 0x12a   : > { %v770_v52 = vpop.trf.xlu0 }
 0x12b   : > { %2377 = vmatmul.msk.f32.gmra.mxu3 %vm545_vm0, %v770_v52 }
 0x132   : > { %v771_v58 = vpop.trf.xlu0 }
 0x133   : > { %2378 = vmatmul.msk.f32.gmra.mxu3 %vm545_vm0, %v771_v58 }
 0x13a   : > { %v772_v2 = vpop.trf.xlu0 }
 0x13b   : > { %2379 = vmatmul.msk.f32.gmra.mxu3 %vm545_vm0, %v772_v2 }
 0x146   : > { %v838_v11 = vpop.f32.mrf.mxu3 }
 0x147   : > { %v978_v12 = vsub.f32 %v838_v11, %v2905_v9 }
 0x149   : > { %v994_v14 = vsel %vm961_vm1, %v978_v12, -inf }
 0x14a   : > { %vm1026_vm2 = vcmp.ge.s32.totalorder %v994_v14, 0  ;;  %v1042_v15 = vxor.u32 2147483647, %v994_v14 }
 0x14c   : > { %v1058_v17 = vsel %vm1026_vm2, %v994_v14, %v1042_v15  ;;  %vm969_vm2 = vcmp.eq.s32.totalorder %v2875_v37, %v2903_v8 }
 0x14d   : > { %v1077_v18 = vand.u32 4294967168, %v1058_v17 }
 0x14e   : > { %v841_v19 = vpop.f32.mrf.mxu3 }
 0x14f   : > { %v2913_v20 = vor.u32 %v1077_v18, %v2909_v16  ;;  %v979_v21 = vsub.f32 %v841_v19, %v2905_v9 }
 0x151   : > { %v995_v22 = vsel %vm962_vm3, %v979_v21, -inf  ;;  %v1111_v23 = vshra.s32 %v2913_v20, 16 }
 0x152   : > { %vm1027_vm4 = vcmp.ge.s32.totalorder %v995_v22, 0  ;;  %v1043_v24 = vxor.u32 2147483647, %v995_v22 }
 0x153   : > { %v2917_v25 = vcvt.s32.f32 %v1111_v23 }
 0x154   : > { %v1059_v26 = vsel %vm1027_vm4, %v995_v22, %v1043_v24  ;;  %vm970_vm4 = vcmp.eq.s32.totalorder %v2878_v39, %v2903_v8 }
 0x155   : > { %v1078_v27 = vand.u32 4294967168, %v1059_v26  ;;  %1114 = vmax.xlane.f32.xlu0 %v2917_v25 }
 0x156   : > { %v844_v28 = vpop.f32.mrf.mxu3 }
 0x157   : > { %v2922_v31 = vor.u32 %v1078_v27, %v2909_v16  ;;  %v980_v34 = vsub.f32 %v844_v28, %v2905_v9 }
 0x159   : > { %v996_v35 = vsel %vm963_vm5, %v980_v34, -inf  ;;  %v1125_v38 = vshra.s32 %v2922_v31, 16 }
 0x15a   : > { %vm1028_vm6 = vcmp.ge.s32.totalorder %v996_v35, 0  ;;  %v1044_v41 = vxor.u32 2147483647, %v996_v35 }
 0x15b   : > { %v2926_v43 = vcvt.s32.f32 %v1125_v38 }
 0x15c   : > { %v1060_v46 = vsel %vm1028_vm6, %v996_v35, %v1044_v41 }
 0x15d   : > { %v1079_v47 = vand.u32 4294967168, %v1060_v46  ;;  %1128 = vmax.xlane.f32.xlu1 %v2926_v43 }
 0x15e   : > { %v847_v48 = vpop.f32.mrf.mxu3 }
 0x15f   : > { %v2930_v49 = vor.u32 %v1079_v47, %v2909_v16  ;;  %v981_v50 = vsub.f32 %v847_v48, %v2905_v9 }
 0x161   : > { %v997_v52 = vsel %vm964_vm7, %v981_v50, -inf  ;;  %v1139_v53 = vshra.s32 %v2930_v49, 16 }
 0x162   : > { %vm1029_vm8 = vcmp.ge.s32.totalorder %v997_v52, 0  ;;  %v1045_v54 = vxor.u32 2147483647, %v997_v52 }
 0x163   : > { %v2936_v55 = vcvt.s32.f32 %v1139_v53 }
 0x164   : > { %v1061_v56 = vsel %vm1029_vm8, %v997_v52, %v1045_v54  ;;  %vm972_vm8 = vcmp.eq.s32.totalorder %v2873_v36, %v2903_v8 }
 0x165   : > { %v1080_v57 = vand.u32 4294967168, %v1061_v56  ;;  %1142 = vmax.xlane.f32.xlu1 %v2936_v55 }
 0x166   : > { %v850_v58 = vpop.f32.mrf.mxu3 }
 0x167   : > { %v2942_v59 = vor.u32 %v1080_v57, %v2909_v16  ;;  %v982_v51 = vsub.f32 %v850_v58, %v2905_v9 }
 0x169   : > { %v998_v60 = vsel %vm965_vm9, %v982_v51, -inf  ;;  %v1153_v61 = vshra.s32 %v2942_v59, 16 }
 0x16a   : > { %vm1030_vm10 = vcmp.ge.s32.totalorder %v998_v60, 0  ;;  %v1046_v62 = vxor.u32 2147483647, %v998_v60 }
 0x16b   : > { %v2946_v63 = vcvt.s32.f32 %v1153_v61 }
 0x16c   : > { %v1062_v0 = vsel %vm1030_vm10, %v998_v60, %v1046_v62  ;;  %vm973_vm10 = vcmp.eq.s32.totalorder %v2862_v30, %v2903_v8 }
 0x16d   : > { %v1081_v1 = vand.u32 4294967168, %v1062_v0  ;;  %1156 = vmax.xlane.f32.xlu2 %v2946_v63 }
 0x16e   : > { %v853_v2 = vpop.f32.mrf.mxu3 }
 0x16f   : > { %v2950_v44 = vor.u32 %v1081_v1, %v2909_v16  ;;  %v983_v3 = vsub.f32 %v853_v2, %v2905_v9 }
 0x171   : > { %v999_v4 = vsel %vm966_vm11, %v983_v3, -inf  ;;  %v1167_v5 = vshra.s32 %v2950_v44, 16 }
 0x172   : > { %vm1031_vm12 = vcmp.ge.s32.totalorder %v999_v4, 0  ;;  %v1047_v6 = vxor.u32 2147483647, %v999_v4 }
 0x173   : > { %v2956_v7 = vcvt.s32.f32 %v1167_v5 }
 0x174   : > { %v1063_v10 = vsel %vm1031_vm12, %v999_v4, %v1047_v6  ;;  %vm974_vm12 = vcmp.eq.s32.totalorder %v2867_v33, %v2903_v8 }
 0x175   : > { %v1082_v11 = vand.u32 4294967168, %v1063_v10  ;;  %1170 = vmax.xlane.f32.xlu1 %v2956_v7 }
 0x176   : > { %v856_v12 = vpop.f32.mrf.mxu3  ;;  %v944_v61 = vpop.permute.xlu0 %943 }
 0x177   : > { %v2960_v13 = vor.u32 %v1082_v11, %v2909_v16  ;;  %v984_v14 = vsub.f32 %v856_v12, %v2905_v9  ;;  %vm971_vm6 = vcmp.eq.s32.totalorder %v944_v61, %v2903_v8 }
 0x179   : > { %v1000_v45 = vsel %vm967_vm13, %v984_v14, -inf  ;;  %v1181_v15 = vshra.s32 %v2960_v13, 16 }
 0x17a   : > { %vm1032_vm14 = vcmp.ge.s32.totalorder %v1000_v45, 0  ;;  %v1048_v17 = vxor.u32 2147483647, %v1000_v45 }
 0x17b   : > { %v2966_v18 = vcvt.s32.f32 %v1181_v15 }
 0x17c   : > { %v1064_v19 = vsel %vm1032_vm14, %v1000_v45, %v1048_v17  ;;  %vm975_vm14 = vcmp.eq.s32.totalorder %v2860_v29, %v2903_v8 }
 0x17d   : > { %v1083_v21 = vand.u32 4294967168, %v1064_v19  ;;  %1184 = vmax.xlane.f32.xlu2 %v2966_v18 }
 0x17e   : > { %v859_v22 = vpop.f32.mrf.mxu3 }
 0x17f   : > { %v2970_v23 = vor.u32 %v1083_v21, %v2909_v16  ;;  %v985_v24 = vsub.f32 %v859_v22, %v2905_v9 }
 0x181   : > { %v1001_v40 = vsel %vm968_vm15, %v985_v24, -inf  ;;  %v1195_v26 = vshra.s32 %v2970_v23, 16 }
 0x182   : > { %vm1033_vm1 = vcmp.ge.s32.totalorder %v1001_v40, 0  ;;  %v1049_v27 = vxor.u32 2147483647, %v1001_v40 }
 0x183   : > { %v2976_v28 = vcvt.s32.f32 %v1195_v26 }
 0x184   : > { %v1065_v34 = vsel %vm1033_vm1, %v1001_v40, %v1049_v27  ;;  %vm976_vm1 = vcmp.eq.s32.totalorder %v2865_v32, %v2903_v8  ;;  %v1138_v8 = vand.u32 65535, %v2930_v49 }
 0x185   : > { %v1084_v35 = vand.u32 4294967168, %v1065_v34  ;;  %1198 = vmax.xlane.f32.xlu1 %v2976_v28 }
 0x186   : > { %v862_v38 = vpop.f32.mrf.mxu3 }
 0x187   : > { %v2980_v41 = vor.u32 %v1084_v35, %v2909_v16  ;;  %v986_v46 = vsub.f32 %v862_v38, %v2905_v9 }
 0x189   : > { %v1002_v42 = vsel %vm969_vm2, %v986_v46, -inf  ;;  %v1209_v47 = vshra.s32 %v2980_v41, 16 }
 0x18a   : > { %vm1034_vm3 = vcmp.ge.s32.totalorder %v1002_v42, 0  ;;  %v1050_v48 = vxor.u32 2147483647, %v1002_v42 }
 0x18b   : > { %v2986_v50 = vcvt.s32.f32 %v1209_v47 }
 0x18c   : > { %v1066_v52 = vsel %vm1034_vm3, %v1002_v42, %v1050_v48 }
 0x18d   : > { %v1085_v53 = vand.u32 4294967168, %v1066_v52  ;;  %1212 = vmax.xlane.f32.xlu2 %v2986_v50 }
 0x18e   : > { %v865_v54 = vpop.f32.mrf.mxu3 }
 0x18f   : > { %v2990_v56 = vor.u32 %v1085_v53, %v2909_v16  ;;  %v987_v57 = vsub.f32 %v865_v54, %v2905_v9 }
 0x191   : > { %v1003_v37 = vsel %vm970_vm4, %v987_v57, -inf  ;;  %v1223_v58 = vshra.s32 %v2990_v56, 16 }
 0x192   : > { %vm1035_vm5 = vcmp.ge.s32.totalorder %v1003_v37, 0  ;;  %v1051_v51 = vxor.u32 2147483647, %v1003_v37 }
 0x193   : > { %v2996_v60 = vcvt.s32.f32 %v1223_v58 }
 0x194   : > { %v1067_v62 = vsel %vm1035_vm5, %v1003_v37, %v1051_v51 }
 0x195   : > { %v1086_v0 = vand.u32 4294967168, %v1067_v62  ;;  %1226 = vmax.xlane.f32.xlu1 %v2996_v60 }
 0x196   : > { %v868_v1 = vpop.f32.mrf.mxu3 }
 0x197   : > { %v3001_v2 = vor.u32 %v1086_v0, %v2909_v16  ;;  %v988_v39 = vsub.f32 %v868_v1, %v2905_v9 }
 0x199   : > { %v1004_v3 = vsel %vm971_vm6, %v988_v39, -inf  ;;  %v1237_v4 = vshra.s32 %v3001_v2, 16 }
 0x19a   : > { %vm1036_vm7 = vcmp.ge.s32.totalorder %v1004_v3, 0  ;;  %v1052_v5 = vxor.u32 2147483647, %v1004_v3 }
 0x19b   : > { %v3005_v6 = vcvt.s32.f32 %v1237_v4 }
 0x19c   : > { %v1068_v10 = vsel %vm1036_vm7, %v1004_v3, %v1052_v5 }
 0x19d   : > { %v1087_v11 = vand.u32 4294967168, %v1068_v10  ;;  %1240 = vmax.xlane.f32.xlu2 %v3005_v6 }
 0x19e   : > { %v871_v12 = vpop.f32.mrf.mxu3 }
 0x19f   : > { %v3009_v14 = vor.u32 %v1087_v11, %v2909_v16  ;;  %v989_v45 = vsub.f32 %v871_v12, %v2905_v9 }
 0x1a1   : > { %v1005_v15 = vsel %vm972_vm8, %v989_v45, -inf  ;;  %v1251_v17 = vshra.s32 %v3009_v14, 16 }
 0x1a2   : > { %vm1037_vm9 = vcmp.ge.s32.totalorder %v1005_v15, 0  ;;  %v1053_v19 = vxor.u32 2147483647, %v1005_v15 }
 0x1a3   : > { %v3015_v21 = vcvt.s32.f32 %v1251_v17 }
 0x1a4   : > { %v1069_v22 = vsel %vm1037_vm9, %v1005_v15, %v1053_v19 }
 0x1a5   : > { %v1088_v24 = vand.u32 4294967168, %v1069_v22  ;;  %1254 = vmax.xlane.f32.xlu2 %v3015_v21 }
 0x1a6   : > { %v874_v40 = vpop.f32.mrf.mxu3 }
 0x1a7   : > { %v3019_v26 = vor.u32 %v1088_v24, %v2909_v16  ;;  %v990_v27 = vsub.f32 %v874_v40, %v2905_v9 }
 0x1a9   : > { %v1006_v36 = vsel %vm973_vm10, %v990_v27, -inf  ;;  %v1265_v34 = vshra.s32 %v3019_v26, 16  ;;  %v1140_v27 = vcvt.s32.f32 %v1138_v8 }
 0x1aa   : > { %vm1038_vm11 = vcmp.ge.s32.totalorder %v1006_v36, 0  ;;  %v1054_v35 = vxor.u32 2147483647, %v1006_v36 }
 0x1ab   : > { %v3025_v38 = vcvt.s32.f32 %v1265_v34  ;;  %v2513_v34 = vld [vmem:[%s4054_s4] sm:$0xff] }
 0x1ac   : > { %v1070_v46 = vsel %vm1038_vm11, %v1006_v36, %v1054_v35  ;;  %2356 = vmatmul.msk.bf16.vlgmr.msra.gmra.mxu1 %vm545_vm0, %v2513_v34 }
 0x1ad   : > { %v1089_v42 = vand.u32 4294967168, %v1070_v46  ;;  %1268 = vmax.xlane.f32.xlu2 %v3025_v38 }
 0x1ae   : > { %v877_v47 = vpop.f32.mrf.mxu3 }
 0x1af   : > { %v3029_v48 = vor.u32 %v1089_v42, %v2909_v16  ;;  %v991_v52 = vsub.f32 %v877_v47, %v2905_v9 }
 0x1b1   : > { %v1007_v30 = vsel %vm974_vm12, %v991_v52, -inf  ;;  %v1279_v53 = vshra.s32 %v3029_v48, 16 }
 0x1b2   : > { %vm1039_vm13 = vcmp.ge.s32.totalorder %v1007_v30, 0  ;;  %v1055_v54 = vxor.u32 2147483647, %v1007_v30 }
 0x1b3   : > { %v3035_v57 = vcvt.s32.f32 %v1279_v53  ;;  %v1180_v53 = vand.u32 65535, %v2960_v13 }
 0x1b4   : > { %v1071_v37 = vsel %vm1039_vm13, %v1007_v30, %v1055_v54 }
 0x1b5   : > { %v1090_v58 = vand.u32 4294967168, %v1071_v37  ;;  %1282 = vmax.xlane.f32.xlu2 %v3035_v57  ;;  %v1182_v37 = vcvt.s32.f32 %v1180_v53 }
 0x1b6   : > { %v880_v51 = vpop.f32.mrf.mxu3 }
 0x1b7   : > { %v3039_v61 = vor.u32 %v1090_v58, %v2909_v16  ;;  %v992_v62 = vsub.f32 %v880_v51, %v2905_v9  ;;  %v1194_v58 = vand.u32 65535, %v2970_v23 }
 0x1b9   : > { %v1008_v33 = vsel %vm975_vm14, %v992_v62, -inf  ;;  %v1293_v0 = vshra.s32 %v3039_v61, 16  ;;  %v1196_v62 = vcvt.s32.f32 %v1194_v58 }
 0x1ba   : > { %vm1040_vm15 = vcmp.ge.s32.totalorder %v1008_v33, 0  ;;  %v1056_v1 = vxor.u32 2147483647, %v1008_v33 }
 0x1bb   : > { %v3045_v39 = vcvt.s32.f32 %v1293_v0 }
 0x1bc   : > { %v1072_v3 = vsel %vm1040_vm15, %v1008_v33, %v1056_v1  ;;  %v1208_v33 = vand.u32 65535, %v2980_v41 }
 0x1bd   : > { %v1091_v4 = vand.u32 4294967168, %v1072_v3  ;;  %1296 = vmax.xlane.f32.xlu1 %v3045_v39  ;;  %v1222_v3 = vand.u32 65535, %v2990_v56 }
 0x1be   : > { %v883_v5 = vpop.f32.mrf.mxu3  ;;  %v1210_v1 = vcvt.s32.f32 %v1208_v33 }
 0x1bf   : > { %v3049_v10 = vor.u32 %v1091_v4, %v2909_v16  ;;  %v993_v11 = vsub.f32 %v883_v5, %v2905_v9  ;;  %v1224_v5 = vcvt.s32.f32 %v1222_v3 }
 0x1c1   : > { %v1009_v29 = vsel %vm976_vm1, %v993_v11, -inf  ;;  %v1307_v12 = vshra.s32 %v3049_v10, 16  ;;  %v1236_v11 = vand.u32 65535, %v3001_v2  ;;  %v1306_v53 = vand.u32 65535, %v3049_v10 }
 0x1c2   : > { %vm1041_vm2 = vcmp.ge.s32.totalorder %v1009_v29, 0  ;;  %v1057_v45 = vxor.u32 2147483647, %v1009_v29 }
 0x1c3   : > { %v3055_v15 = vcvt.s32.f32 %v1307_v12  ;;  %v1238_v12 = vcvt.s32.f32 %v1236_v11 }
 0x1c4   : > { %v1073_v17 = vsel %vm1041_vm2, %v1009_v29, %v1057_v45  ;;  %v1250_v45 = vand.u32 65535, %v3009_v14 }
 0x1c5   : > { %v1092_v19 = vand.u32 4294967168, %v1073_v17  ;;  %1310 = vmax.xlane.f32.xlu2 %v3055_v15 }
 0x1c7   : > { %v3059_v22 = vor.u32 %v1092_v19, %v2909_v16  ;;  %v1152_v16 = vand.u32 65535, %v2942_v59  ;;  %v1252_v19 = vcvt.s32.f32 %v1250_v45 }
 0x1c8   : > { %v3144_v33 = vpop.xlane.xlu0 %1114 }
 0x1c9   : > { %v1321_v24 = vshra.s32 %v3059_v22, 16  ;;  %v1154_v46 = vcvt.s32.f32 %v1152_v16  ;;  %v1278_v16 = vand.u32 65535, %v3029_v48  ;;  %v1320_v58 = vand.u32 65535, %v3059_v22 }
 0x1cb   : > { %v3062_v9 = vcvt.s32.f32 %v1321_v24  ;;  %v1264_v24 = vand.u32 65535, %v3019_v26 }
 0x1cd   : > { %1324 = vmax.xlane.f32.xlu1 %v3062_v9 }
 0x1d0   : > { %v3065_v32 = vpop.xlane.xlu1 %1128 }
 0x1d1   : > { %vm1130_vm13 = vcmp.eq.f32.partialorder %v2926_v43, %v3065_v32 }
 0x1d8   : > { %v3068_v40 = vpop.xlane.xlu1 %1142 }
 0x1d9   : > { %vm1144_vm3 = vcmp.eq.f32.partialorder %v2936_v55, %v3068_v40  ;;  %v1166_v55 = vand.u32 65535, %v2950_v44  ;;  %v1149_v3 = vcvt.f32.s32 %v3068_v40 }
 0x1da   : > { %v1145_v36 = vsel %vm1144_vm3, %v1140_v27, -inf  ;;  %v1266_v27 = vcvt.s32.f32 %v1264_v24  ;;  %vm1116_vm3 = vcmp.eq.f32.partialorder %v2917_v25, %v3144_v33 }
 0x1db   : > { %1146 = vmax.xlane.f32.xlu1 %v1145_v36  ;;  %v1168_v52 = vcvt.s32.f32 %v1166_v55  ;;  %v1124_v36 = vand.u32 65535, %v2922_v31 }
 0x1dd   : > { %v1126_v34 = vcvt.s32.f32 %v1124_v36 }
 0x1e0   : > { %v3076_v35 = vpop.xlane.xlu2 %1156 }
 0x1e1   : > { %vm1158_vm4 = vcmp.eq.f32.partialorder %v2946_v63, %v3076_v35 }
 0x1e2   : > { %v1159_v42 = vsel %vm1158_vm4, %v1154_v46, -inf  ;;  %v1280_v46 = vcvt.s32.f32 %v1278_v16 }
 0x1e3   : > { %1160 = vmax.xlane.f32.xlu2 %v1159_v42  ;;  %v1131_v42 = vsel %vm1130_vm13, %v1126_v34, -inf }
 0x1e8   : > { %v3082_v47 = vpop.xlane.xlu1 %1170 }
 0x1e9   : > { %vm1172_vm5 = vcmp.eq.f32.partialorder %v2956_v7, %v3082_v47 }
 0x1ea   : > { %v1173_v30 = vsel %vm1172_vm5, %v1168_v52, -inf }
 0x1eb   : > { %1174 = vmax.xlane.f32.xlu2 %v1173_v30 }
 0x1f0   : > { %v3087_v54 = vpop.xlane.xlu2 %1184 }
 0x1f1   : > { %vm1186_vm6 = vcmp.eq.f32.partialorder %v2966_v18, %v3087_v54  ;;  %v1191_v36 = vcvt.f32.s32 %v3087_v54 }
 0x1f2   : > { %v1187_v63 = vsel %vm1186_vm6, %v1182_v37, -inf }
 0x1f3   : > { %1188 = vmax.xlane.f32.xlu0 %v1187_v63  ;;  %v1308_v63 = vcvt.s32.f32 %v1306_v53 }
 0x1f8   : > { %v3092_v51 = vpop.xlane.xlu1 %1198 }
 0x1f9   : > { %vm1200_vm7 = vcmp.eq.f32.partialorder %v2976_v28, %v3092_v51 }
 0x1fa   : > { %v1201_v7 = vsel %vm1200_vm7, %v1196_v62, -inf }
 0x1fb   : > { %1202 = vmax.xlane.f32.xlu0 %v1201_v7  ;;  %v1322_v7 = vcvt.s32.f32 %v1320_v58 }
 0x200   : > { %v3097_v0 = vpop.xlane.xlu2 %1212 }
 0x201   : > { %vm1214_vm8 = vcmp.eq.f32.partialorder %v2986_v50, %v3097_v0 }
 0x202   : > { %v1215_v18 = vsel %vm1214_vm8, %v1210_v1, -inf  ;;  %v1110_v1 = vand.u32 65535, %v2913_v20 }
 0x203   : > { %1216 = vmax.xlane.f32.xlu1 %v1215_v18 }
 0x208   : > { %v3102_v4 = vpop.xlane.xlu1 %1226 }
 0x209   : > { %vm1228_vm9 = vcmp.eq.f32.partialorder %v2996_v60, %v3102_v4 }
 0x20a   : > { %v1229_v28 = vsel %vm1228_vm9, %v1224_v5, -inf }
 0x20b   : > { %1230 = vmax.xlane.f32.xlu1 %v1229_v28  ;;  %v1150_v28 = vshll.u32 %v1149_v3, 16 }
 0x210   : > { %v3107_v29 = vpop.xlane.xlu2 %1240 }
 0x211   : > { %vm1242_vm10 = vcmp.eq.f32.partialorder %v3005_v6, %v3107_v29 }
 0x212   : > { %v1243_v50 = vsel %vm1242_vm10, %v1238_v12, -inf }
 0x213   : > { %1244 = vmax.xlane.f32.xlu2 %v1243_v50 }
 0x218   : > { %v3112_v17 = vpop.xlane.xlu2 %1254 }
 0x219   : > { %vm1256_vm11 = vcmp.eq.f32.partialorder %v3015_v21, %v3112_v17 }
 0x21a   : > { %v1257_v60 = vsel %vm1256_vm11, %v1252_v19, -inf }
 0x21b   : > { %1258 = vmax.xlane.f32.xlu2 %v1257_v60 }
 0x220   : > { %v3117_v8 = vpop.xlane.xlu2 %1268 }
 0x221   : > { %vm1270_vm12 = vcmp.eq.f32.partialorder %v3025_v38, %v3117_v8  ;;  %v1292_v38 = vand.u32 65535, %v3039_v61 }
 0x222   : > { %v1271_v6 = vsel %vm1270_vm12, %v1266_v27, -inf }
 0x223   : > { %1272 = vmax.xlane.f32.xlu0 %v1271_v6  ;;  %v1294_v30 = vcvt.s32.f32 %v1292_v38  ;;  %v1177_v6 = vcvt.f32.s32 %v3082_v47 }
 0x225   : > { %v1178_v34 = vshll.u32 %v1177_v6, 16  ;;  %v1261_v6 = vcvt.f32.s32 %v3112_v17 }
 0x228   : > { %v3125_v21 = vpop.xlane.xlu2 %1282 }
 0x229   : > { %vm1284_vm14 = vcmp.eq.f32.partialorder %v3035_v57, %v3125_v21 }
 0x22a   : > { %v1285_v55 = vsel %vm1284_vm14, %v1280_v46, -inf }
 0x22b   : > { %1132 = vmax.xlane.f32.xlu0 %v1131_v42  ;;  %1286 = vmax.xlane.f32.xlu1 %v1285_v55  ;;  %v1192_v42 = vshll.u32 %v1191_v36, 16  ;;  %v1275_v36 = vcvt.f32.s32 %v3117_v8 }
 0x230   : > { %v3130_v52 = vpop.xlane.xlu1 %1296 }
 0x231   : > { %vm1298_vm15 = vcmp.eq.f32.partialorder %v3045_v39, %v3130_v52 }
 0x232   : > { %v1299_v43 = vsel %vm1298_vm15, %v1294_v30, -inf }
 0x233   : > { %1300 = vmax.xlane.f32.xlu2 %v1299_v43  ;;  %v1205_v43 = vcvt.f32.s32 %v3092_v51 }
 0x238   : > { %v3135_v37 = vpop.xlane.xlu2 %1310 }
 0x239   : > { %vm1312_vm1 = vcmp.eq.f32.partialorder %v3055_v15, %v3135_v37  ;;  %v1112_v15 = vcvt.s32.f32 %v1110_v1 }
 0x23a   : > { %v1313_v57 = vsel %vm1312_vm1, %v1308_v63, -inf }
 0x23b   : > { %1314 = vmax.xlane.f32.xlu1 %v1313_v57  ;;  %v1117_v18 = vsel %vm1116_vm3, %v1112_v15, -inf  ;;  %v1206_v57 = vshll.u32 %v1205_v43, 16 }
 0x240   : > { %v3140_v62 = vpop.xlane.xlu1 %1324 }
 0x241   : > { %vm1326_vm2 = vcmp.eq.f32.partialorder %v3062_v9, %v3140_v62  ;;  %v1163_v9 = vcvt.f32.s32 %v3076_v35  ;;  %v649_v35 = vpop.f32.mrf.mxu1 }
 0x242   : > { %v1327_v39 = vsel %vm1326_vm2, %v1322_v7, -inf  ;;  %664 = vrot.lane.b32.xlu0 %v649_v35, %s2641_s29 }
 0x243   : > { %1328 = vmax.xlane.f32.xlu2 %v1327_v39  ;;  %v1164_v25 = vshll.u32 %v1163_v9, 16 }
 0x24b   : > { %1118 = vmax.xlane.f32.xlu2 %v1117_v18 }
 0x24e   : > { %v1147_v5 = vpop.xlane.xlu1 %1146 }
 0x24f   : > { %v1148_v11 = vcvt.f32.s32 %v1147_v5 }
 0x251   : > { %v1151_v12 = vadd.s32 %v1150_v28, %v1148_v11  ;;  %v1233_v11 = vcvt.f32.s32 %v3102_v4 }
 0x253   : > { %vm1336_vm4 = vcmp.eq.s32.totalorder %v2930_v49, %v1151_v12  ;;  %v1247_v12 = vcvt.f32.s32 %v3107_v29 }
 0x254   : > { %v3153_v50 = vsel %vm1336_vm4, 2147483648, %v2930_v49 }
 0x255   : > { %v1435_v45 = vshra.s32 %v3153_v50, 16 }
 0x256   : > { %v1161_v19 = vpop.xlane.xlu2 %1160 }
 0x257   : > { %v1162_v60 = vcvt.f32.s32 %v1161_v19  ;;  %v3156_v24 = vcvt.s32.f32 %v1435_v45  ;;  %v1234_v45 = vshll.u32 %v1233_v11, 16 }
 0x259   : > { %v3158_v40 = vadd.s32 %v1164_v25, %v1162_v60  ;;  %1438 = vmax.xlane.f32.xlu1 %v3156_v24  ;;  %v1248_v25 = vshll.u32 %v1247_v12, 16 }
 0x25b   : > { %vm1337_vm5 = vcmp.eq.s32.totalorder %v2942_v59, %v3158_v40 }
 0x25c   : > { %vm3166_vm6 = vmpackc.low %vm1337_vm5, %vm1336_vm4 }
 0x25e   : > { %v1175_v27 = vpop.xlane.xlu2 %1174 }
 0x25f   : > { %v1176_v16 = vcvt.f32.s32 %v1175_v27 }
 0x261   : > { %v3173_v55 = vadd.s32 %v1178_v34, %v1176_v16  ;;  %v1262_v34 = vshll.u32 %v1261_v6, 16 }
 0x263   : > { %vm1338_vm7 = vcmp.eq.s32.totalorder %v2950_v44, %v3173_v55 }
 0x266   : > { %v1189_v46 = vpop.xlane.xlu0 %1188 }
 0x267   : > { %v1190_v38 = vcvt.f32.s32 %v1189_v46 }
 0x269   : > { %v1193_v30 = vadd.s32 %v1192_v42, %v1190_v38  ;;  %v1276_v42 = vshll.u32 %v1275_v36, 16 }
 0x26b   : > { %vm1339_vm8 = vcmp.eq.s32.totalorder %v2960_v13, %v1193_v30 }
 0x26c   : > { %v3180_v53 = vsel %vm1339_vm8, 2147483648, %v2960_v13  ;;  %vm3185_vm9 = vmpackc.low %vm1339_vm8, %vm1338_vm7  ;;  %v1219_v13 = vcvt.f32.s32 %v3097_v0 }
 0x26d   : > { %v1477_v54 = vshra.s32 %v3180_v53, 16 }
 0x26e   : > { %v1203_v63 = vpop.xlane.xlu0 %1202  ;;  %v1220_v18 = vshll.u32 %v1219_v13, 16 }
 0x26f   : > { %v1204_v51 = vcvt.f32.s32 %v1203_v63  ;;  %v3190_v58 = vcvt.s32.f32 %v1477_v54  ;;  %v1135_v54 = vcvt.f32.s32 %v3065_v32  ;;  %v1289_v63 = vcvt.f32.s32 %v3125_v21 }
 0x271   : > { %v1207_v7 = vadd.s32 %v1206_v57, %v1204_v51  ;;  %1480 = vmax.xlane.f32.xlu1 %v3190_v58  ;;  %v1136_v51 = vshll.u32 %v1135_v54, 16  ;;  %v1290_v13 = vshll.u32 %v1289_v63, 16 }
 0x273   : > { %vm1340_vm10 = vcmp.eq.s32.totalorder %v2970_v23, %v1207_v7 }
 0x274   : > { %v3196_v39 = vsel %vm1340_vm10, 2147483648, %v2970_v23 }
 0x275   : > { %v1491_v1 = vshra.s32 %v3196_v39, 16 }
 0x276   : > { %v1217_v15 = vpop.xlane.xlu1 %1216 }
 0x277   : > { %v1218_v3 = vcvt.f32.s32 %v1217_v15  ;;  %v3199_v5 = vcvt.s32.f32 %v1491_v1 }
 0x279   : > { %v3201_v28 = vadd.s32 %v1220_v18, %v1218_v3  ;;  %1494 = vmax.xlane.f32.xlu1 %v3199_v5  ;;  %v1303_v3 = vcvt.f32.s32 %v3130_v52 }
 0x27b   : > { %vm1341_vm11 = vcmp.eq.s32.totalorder %v2980_v41, %v3201_v28 }
 0x27c   : > { %vm3209_vm12 = vmpackc.low %vm1341_vm11, %vm1340_vm10 }
 0x27e   : > { %v1231_v0 = vpop.xlane.xlu1 %1230 }
 0x27f   : > { %v1232_v9 = vcvt.f32.s32 %v1231_v0 }
 0x281   : > { %v3215_v60 = vadd.s32 %v1234_v45, %v1232_v9  ;;  %v1304_v45 = vshll.u32 %v1303_v3, 16 }
 0x283   : > { %vm1342_vm14 = vcmp.eq.s32.totalorder %v2990_v56, %v3215_v60 }
 0x284   : > { %v3384_v17 = vsel %vm1342_vm14, 2147483648, %v2990_v56 }
 0x286   : > { %v1245_v19 = vpop.xlane.xlu2 %1244 }
 0x287   : > { %v1246_v35 = vcvt.f32.s32 %v1245_v19 }
 0x289   : > { %v1249_v27 = vadd.s32 %v1248_v25, %v1246_v35 }
 0x28b   : > { %vm1343_vm13 = vcmp.eq.s32.totalorder %v3001_v2, %v1249_v27 }
 0x28c   : > { %vm3225_vm15 = vmpackc.low %vm1343_vm13, %vm1342_vm14 }
 0x28e   : > { %v1259_v29 = vpop.xlane.xlu2 %1258 }
 0x28f   : > { %v1260_v16 = vcvt.f32.s32 %v1259_v29  ;;  %v3275_v29 = vsel %vm1338_vm7, 2147483648, %v2950_v44 }
 0x290   : > { %v1463_v36 = vshra.s32 %v3275_v29, 16 }
 0x291   : > { %v1263_v38 = vadd.s32 %v1262_v34, %v1260_v16  ;;  %v3298_v16 = vsel %vm1343_vm13, 2147483648, %v3001_v2 }
 0x292   : > { %v3293_v44 = vcvt.s32.f32 %v1463_v36 }
 0x293   : > { %vm1344_vm1 = vcmp.eq.s32.totalorder %v3009_v14, %v1263_v38  ;;  %v2642_v38 = vmov 1.0|1.0  }
 0x294   : > { %v3309_v2 = vsel %vm1344_vm1, 2147483648, %v3009_v14 }
 0x295   : > { %v1547_v27 = vshra.s32 %v3309_v2, 16 }
 0x296   : > { %v1273_v46 = vpop.xlane.xlu0 %1272 }
 0x297   : > { %v1274_v30 = vcvt.f32.s32 %v1273_v46  ;;  %v1317_v46 = vcvt.f32.s32 %v3135_v37 }
 0x299   : > { %v1277_v43 = vadd.s32 %v1276_v42, %v1274_v30  ;;  %v1533_v30 = vshra.s32 %v3298_v16, 16 }
 0x29b   : > { %vm1345_vm2 = vcmp.eq.s32.totalorder %v3019_v26, %v1277_v43  ;;  %v1318_v43 = vshll.u32 %v1317_v46, 16 }
 0x29c   : > { %v3236_v57 = vsel %vm1345_vm2, 2147483648, %v3019_v26  ;;  %vm3240_vm3 = vmpackc.low %vm1345_vm2, %vm1344_vm1 }
 0x29d   : > { %v1561_v8 = vshra.s32 %v3236_v57, 16 }
 0x29e   : > { %v1133_v7 = vpop.xlane.xlu0 %1132  ;;  %v1287_v32 = vpop.xlane.xlu1 %1286 }
 0x29f   : > { %v1134_v21 = vcvt.f32.s32 %v1133_v7  ;;  %v1288_v1 = vcvt.f32.s32 %v1287_v32  ;;  %v3245_v15 = vcvt.s32.f32 %v1561_v8  ;;  %v3304_v7 = vcvt.s32.f32 %v1533_v30 }
 0x2a1   : > { %v3247_v18 = vadd.s32 %v1136_v51, %v1134_v21  ;;  %v1291_v26 = vadd.s32 %v1290_v13, %v1288_v1  ;;  %1564 = vmax.xlane.f32.xlu1 %v3245_v15  ;;  %v3323_v21 = vcvt.s32.f32 %v1547_v27 }
 0x2a3   : > { %vm1335_vm4 = vcmp.eq.s32.totalorder %v2922_v31, %v3247_v18  ;;  %vm1346_vm8 = vcmp.eq.s32.totalorder %v3029_v48, %v1291_v26  ;;  %v2514_v26 = vld [vmem:[%s4054_s4 + $0x8] sm:$0xff] }
 0x2a4   : > { %v3258_v0 = vsel %vm1335_vm4, 2147483648, %v2922_v31  ;;  %v3263_v11 = vsel %vm1346_vm8, 2147483648, %v3029_v48  ;;  %v1331_v48 = vcvt.f32.s32 %v3140_v62  ;;  %v1121_v62 = vcvt.f32.s32 %v3144_v33  ;;  %2357 = vmatmul.msk.bf16.gmra.mxu1 %vm545_vm0, %v2514_v26 }
 0x2a5   : > { %v1575_v12 = vshra.s32 %v3263_v11, 16  ;;  %v1421_v52 = vshra.s32 %v3258_v0, 16  ;;  %v1420_v47 = vand.u32 65535, %v3258_v0 }
 0x2a6   : > { %v1301_v9 = vpop.xlane.xlu2 %1300  ;;  %v1332_v63 = vshll.u32 %v1331_v48, 16  ;;  %v1122_v32 = vshll.u32 %v1121_v62, 16 }
 0x2a7   : > { %v1302_v19 = vcvt.f32.s32 %v1301_v9  ;;  %v3267_v25 = vcvt.s32.f32 %v1575_v12  ;;  %v3269_v35 = vcvt.s32.f32 %v1421_v52 }
 0x2a9   : > { %v3277_v6 = vadd.s32 %v1304_v45, %v1302_v19  ;;  %1578 = vmax.xlane.f32.xlu1 %v3267_v25  ;;  %1424 = vmax.xlane.f32.xlu0 %v3269_v35  ;;  %v3352_v45 = vsel %vm1337_vm5, 2147483648, %v2942_v59  ;;  %v1434_v19 = vand.u32 65535, %v3153_v50 }
 0x2aa   : > { %v1449_v36 = vshra.s32 %v3352_v45, 16 }
 0x2ab   : > { %vm1347_vm10 = vcmp.eq.s32.totalorder %v3039_v61, %v3277_v6  ;;  %v1436_v40 = vcvt.s32.f32 %v1434_v19  ;;  %v1422_v6 = vcvt.s32.f32 %v1420_v47  ;;  %v1518_v47 = vand.u32 65535, %v3384_v17 }
 0x2ac   : > { %vm3289_vm2 = vmpackc.low %vm1347_vm10, %vm1346_vm8  ;;  %v3365_v59 = vcvt.s32.f32 %v1449_v36  ;;  %v3397_v4 = vsel %vm1347_vm10, 2147483648, %v3039_v61 }
 0x2ad   : > { %v1589_v56 = vshra.s32 %v3397_v4, 16 }
 0x2ae   : > { %v1315_v34 = vpop.xlane.xlu1 %1314 }
 0x2af   : > { %v1316_v42 = vcvt.f32.s32 %v1315_v34  ;;  %v3371_v34 = vsel %vm1341_vm11, 2147483648, %v2980_v41  ;;  %v1519_v41 = vshra.s32 %v3384_v17, 16  ;;  %v3404_v60 = vcvt.s32.f32 %v1589_v56 }
 0x2b0   : > { %v1505_v48 = vshra.s32 %v3371_v34, 16 }
 0x2b1   : > { %1466 = vmax.xlane.f32.xlu0 %v3293_v44  ;;  %v1319_v8 = vadd.s32 %v1318_v43, %v1316_v42  ;;  %v3391_v28 = vcvt.s32.f32 %v1519_v41 }
 0x2b3   : > { %vm1348_vm7 = vcmp.eq.s32.totalorder %v3049_v10, %v1319_v8 }
 0x2b4   : > { %v3326_v33 = vsel %vm1348_vm7, 2147483648, %v3049_v10  ;;  %v3416_v61 = vpop.permute.xlu0 %664 }
 0x2b5   : > { %v1603_v3 = vshra.s32 %v3326_v33, 16 }
 0x2b6   : > { %v1329_v54 = vpop.xlane.xlu2 %1328 }
 0x2b7   : > { %v1330_v51 = vcvt.f32.s32 %v1329_v54  ;;  %v3346_v9 = vcvt.s32.f32 %v1603_v3  ;;  %v1490_v54 = vand.u32 65535, %v3196_v39 }
 0x2b9   : > { %v3311_v37 = vadd.s32 %v1332_v63, %v1330_v51  ;;  %1536 = vmax.xlane.f32.xlu0 %v3304_v7  ;;  %v1492_v63 = vcvt.s32.f32 %v1490_v54  ;;  %v1574_v54 = vand.u32 65535, %v3263_v11 }
 0x2bb   : > { %vm1349_vm13 = vcmp.eq.s32.totalorder %v3059_v22, %v3311_v37 }
 0x2bc   : > { %vm2428_vm8 = vmpackc.low %vm1349_vm13, %vm1348_vm7 }
 0x2bd   : > { %2429 = vmatpush.bf16.xpose.msk.msrb.mxu0 %vm2428_vm8, %v2642_v38 }
 0x2be   : > { %v1119_v14 = vpop.xlane.xlu2 %1118 }
 0x2bf   : > { %v1120_v13 = vcvt.f32.s32 %v1119_v14 }
 0x2c1   : > { %v1123_v1 = vadd.s32 %v1122_v32, %v1120_v13  ;;  %1550 = vmax.xlane.f32.xlu0 %v3323_v21 }
 0x2c3   : > { %vm1334_vm1 = vcmp.eq.s32.totalorder %v2913_v20, %v1123_v1 }
 0x2c4   : > { %v3337_v12 = vsel %vm1334_vm1, 2147483648, %v2913_v20  ;;  %vm2442_vm5 = vmpackc.low %vm1335_vm4, %vm1334_vm1  ;;  %v1476_v20 = vand.u32 65535, %v3180_v53 }
 0x2c5   : > { %2431 = vmatpush.bf16.xpose.msk.msrb.mxu0 %vm3289_vm2, %v2642_v38  ;;  %v1407_v10 = vshra.s32 %v3337_v12, 16  ;;  %v1406_v32 = vand.u32 65535, %v3337_v12 }
 0x2c6   : > { %v1478_v18 = vcvt.s32.f32 %v1476_v20 }
 0x2c7   : > { %v3344_v52 = vcvt.s32.f32 %v1407_v10  ;;  %v1408_v26 = vcvt.s32.f32 %v1406_v32 }
 0x2c9   : > { %1410 = vmax.xlane.f32.xlu2 %v3344_v52  ;;  %1606 = vmax.xlane.f32.xlu0 %v3346_v9 }
 0x2cc   : > { %v3358_v55 = vpop.xlane.xlu1 %1438 }
 0x2cd   : > { %2433 = vmatpush.bf16.xpose.msk.msrb.mxu0 %vm3240_vm3, %v2642_v38  ;;  %vm1440_vm2 = vcmp.eq.f32.partialorder %v3156_v24, %v3358_v55  ;;  %v3378_v24 = vcvt.s32.f32 %v1505_v48 }
 0x2ce   : > { %v1441_v46 = vsel %vm1440_vm2, %v1436_v40, -inf }
 0x2d1   : > { %1452 = vmax.xlane.f32.xlu2 %v3365_v59  ;;  %1442 = vmax.xlane.f32.xlu0 %v1441_v46 }
 0x2d5   : > { %2435 = vmatpush.bf16.xpose.msk.msrb.mxu0 %vm3225_vm15, %v2642_v38 }
 0x2d9   : > { %1508 = vmax.xlane.f32.xlu2 %v3378_v24 }
 0x2dd   : > { %2437 = vmatpush.bf16.xpose.msk.msrb.mxu0 %vm3209_vm12, %v2642_v38 }
 0x2e1   : > { %1522 = vmax.xlane.f32.xlu2 %v3391_v28 }
 0x2e4   : > { %v3423_v49 = vpop.xlane.xlu1 %1480 }
 0x2e5   : > { %2439 = vmatpush.bf16.xpose.msk.msrb.mxu0 %vm3185_vm9, %v2642_v38 }
 0x2e9   : > { %1592 = vmax.xlane.f32.xlu2 %v3404_v60 }
 0x2ec   : > { %v3430_v43 = vpop.xlane.xlu1 %1494 }
 0x2ed   : > { %2441 = vmatpush.bf16.xpose.msk.msrb.mxu0 %vm3166_vm6, %v2642_v38  ;;  %vm1482_vm6 = vcmp.eq.f32.partialorder %v3190_v58, %v3423_v49  ;;  %vm1496_vm11 = vcmp.eq.f32.partialorder %v3199_v5, %v3430_v43  ;;  %v1560_v58 = vand.u32 65535, %v3236_v57  ;;  %v1602_v5 = vand.u32 65535, %v3326_v33 }
 0x2ee   : > { %v1483_v30 = vsel %vm1482_vm6, %v1478_v18, -inf  ;;  %v1497_v8 = vsel %vm1496_vm11, %v1492_v63, -inf  ;;  %v1532_v63 = vand.u32 65535, %v3298_v16 }
 0x2ef   : > { %v1562_v27 = vcvt.s32.f32 %v1560_v58  ;;  %v1604_v3 = vcvt.s32.f32 %v1602_v5 }
 0x2f5   : > { %2443 = vmatpush.bf16.xpose.msk.msrb.mxu0 %vm2442_vm5, %v2642_v38 }
 0x314   : > { %v3437_v51 = vpop.xlane.xlu1 %1564 }
 0x315   : > { %vm1566_vm12 = vcmp.eq.f32.partialorder %v3245_v15, %v3437_v51  ;;  %v3458_v15 = vsel %vm1349_vm13, 2147483648, %v3059_v22 }
 0x316   : > { %v1567_v14 = vsel %vm1566_vm12, %v1562_v27, -inf  ;;  %v1617_v36 = vshra.s32 %v3458_v15, 16  ;;  %v1546_v27 = vand.u32 65535, %v3309_v2 }
 0x318   : > { %v3463_v46 = vcvt.s32.f32 %v1617_v36 }
 0x31c   : > { %v3419_v23 = vpop.xlane.xlu0 %1424 }
 0x31d   : > { %vm1426_vm9 = vcmp.eq.f32.partialorder %v3269_v35, %v3419_v23 }
 0x31e   : > { %v1427_v42 = vsel %vm1426_vm9, %v1422_v6, -inf  ;;  %v1462_v6 = vand.u32 65535, %v3275_v29 }
 0x31f   : > { %1428 = vmax.xlane.f32.xlu2 %v1427_v42 }
 0x320   : > { %v1464_v20 = vcvt.s32.f32 %v1462_v6 }
 0x324   : > { %v3428_v31 = vpop.xlane.xlu0 %1466 }
 0x325   : > { %vm1468_vm10 = vcmp.eq.f32.partialorder %v3293_v44, %v3428_v31  ;;  %v1576_v44 = vcvt.s32.f32 %v1574_v54 }
 0x327   : > { %1484 = vmax.xlane.f32.xlu2 %v1483_v30  ;;  %v3482_v30 = vpop.xlane.xlu1 %1578 }
 0x328   : > { %vm1580_vm13 = vcmp.eq.f32.partialorder %v3267_v25, %v3482_v30  ;;  %v1588_v25 = vand.u32 65535, %v3397_v4 }
 0x329   : > { %v1581_v58 = vsel %vm1580_vm13, %v1576_v44, -inf  ;;  %v1487_v44 = vcvt.f32.s32 %v3423_v49 }
 0x32c   : > { %v3435_v35 = vpop.xlane.xlu0 %1536 }
 0x32d   : > { %vm1538_vm8 = vcmp.eq.f32.partialorder %v3304_v7, %v3435_v35  ;;  %v1590_v7 = vcvt.s32.f32 %v1588_v25  ;;  %v1501_v25 = vcvt.f32.s32 %v3430_v43 }
 0x32f   : > { %1498 = vmax.xlane.f32.xlu2 %v1497_v8  ;;  %v1534_v8 = vcvt.s32.f32 %v1532_v63  ;;  %v1616_v63 = vand.u32 65535, %v3458_v15 }
 0x331   : > { %v1618_v49 = vcvt.s32.f32 %v1616_v63 }
 0x334   : > { %v3442_v62 = vpop.xlane.xlu0 %1550 }
 0x335   : > { %vm1552_vm1 = vcmp.eq.f32.partialorder %v3323_v21, %v3442_v62 }
 0x337   : > { %1568 = vmax.xlane.f32.xlu2 %v1567_v14  ;;  %v1548_v14 = vcvt.s32.f32 %v1546_v27  ;;  %v1488_v27 = vshll.u32 %v1487_v44, 16 }
 0x339   : > { %v1553_v32 = vsel %vm1552_vm1, %v1548_v14, -inf }
 0x33c   : > { %v3446_v13 = vpop.xlane.xlu2 %1410  ;;  %v3448_v1 = vpop.xlane.xlu0 %1606 }
 0x33d   : > { %vm1412_vm14 = vcmp.eq.f32.partialorder %v3344_v52, %v3446_v13  ;;  %vm1608_vm15 = vcmp.eq.f32.partialorder %v3346_v9, %v3448_v1  ;;  %v1448_v52 = vand.u32 65535, %v3352_v45  ;;  %v1504_v9 = vand.u32 65535, %v3371_v34 }
 0x33e   : > { %v1413_v10 = vsel %vm1412_vm14, %v1408_v26, -inf  ;;  %v1609_v19 = vsel %vm1608_vm15, %v1604_v3, -inf  ;;  %v651_v3 = vpop.f32.mrf.mxu1 }
 0x33f   : > { %1414 = vmax.xlane.f32.xlu1 %v1413_v10  ;;  %1610 = vmax.xlane.f32.xlu2 %v1609_v19  ;;  %v1450_v37 = vcvt.s32.f32 %v1448_v52  ;;  %v1506_v48 = vcvt.s32.f32 %v1504_v9  ;;  %v1431_v10 = vcvt.f32.s32 %v3419_v23  ;;  %v1445_v23 = vcvt.f32.s32 %v3358_v55 }
 0x341   : > { %v1432_v21 = vshll.u32 %v1431_v10, 16 }
 0x344   : > { %v3461_v40 = vpop.xlane.xlu2 %1452 }
 0x345   : > { %vm1454_vm3 = vcmp.eq.f32.partialorder %v3365_v59, %v3461_v40  ;;  %v1520_v59 = vcvt.s32.f32 %v1518_v47  ;;  %v1446_v47 = vshll.u32 %v1445_v23, 16 }
 0x346   : > { %v1455_v41 = vsel %vm1454_vm3, %v1450_v37, -inf }
 0x347   : > { %1620 = vmax.xlane.f32.xlu1 %v3463_v46 }
 0x34c   : > { %v3470_v22 = vpop.xlane.xlu2 %1508 }
 0x34d   : > { %vm1510_vm4 = vcmp.eq.f32.partialorder %v3378_v24, %v3470_v22  ;;  %v1469_v24 = vsel %vm1468_vm10, %v1464_v20, -inf }
 0x34e   : > { %v1511_v56 = vsel %vm1510_vm4, %v1506_v48, -inf  ;;  %v1443_v48 = vpop.xlane.xlu0 %1442 }
 0x34f   : > { %1456 = vmax.xlane.f32.xlu1 %v1455_v41  ;;  %1512 = vmax.xlane.f32.xlu0 %v1511_v56  ;;  %v1417_v41 = vcvt.f32.s32 %v3446_v13  ;;  %v1444_v56 = vcvt.f32.s32 %v1443_v48 }
 0x351   : > { %v1418_v20 = vshll.u32 %v1417_v41, 16 }
 0x354   : > { %v3478_v42 = vpop.xlane.xlu2 %1522 }
 0x355   : > { %vm1524_vm7 = vcmp.eq.f32.partialorder %v3391_v28, %v3478_v42  ;;  %v1539_v28 = vsel %vm1538_vm8, %v1534_v8, -inf }
 0x356   : > { %v1525_v18 = vsel %vm1524_vm7, %v1520_v59, -inf }
 0x357   : > { %1526 = vmax.xlane.f32.xlu0 %v1525_v18  ;;  %1470 = vmax.xlane.f32.xlu1 %v1469_v24  ;;  %v3512_v24 = vadd.s32 %v1446_v47, %v1444_v56  ;;  %v1571_v47 = vcvt.f32.s32 %v3437_v51 }
 0x359   : > { %vm1632_vm6 = vcmp.eq.s32.totalorder %v3153_v50, %v3512_v24  ;;  %v1572_v44 = vshll.u32 %v1571_v47, 16 }
 0x35c   : > { %v3493_v5 = vpop.xlane.xlu2 %1592 }
 0x35d   : > { %vm1594_vm2 = vcmp.eq.f32.partialorder %v3404_v60, %v3493_v5 }
 0x35e   : > { %v1595_v26 = vsel %vm1594_vm2, %v1590_v7, -inf }
 0x35f   : > { %1582 = vmax.xlane.f32.xlu0 %v1581_v58  ;;  %1540 = vmax.xlane.f32.xlu1 %v1539_v28 }
 0x367   : > { %1554 = vmax.xlane.f32.xlu1 %v1553_v32 }
 0x36f   : > { %1596 = vmax.xlane.f32.xlu1 %v1595_v26  ;;  %v1459_v26 = vcvt.f32.s32 %v3461_v40 }
 0x388   : > { %666 = vrot.lane.b32.xlu1 %v651_v3, %s2641_s29  ;;  %v1515_v3 = vcvt.f32.s32 %v3470_v22  ;;  %s2256_s29 = scalar_lea.hbm %s4066_s16, %s2521_s30 }
 0x38a   : > { %v1516_v43 = vshll.u32 %v1515_v3, 16 }
 0x392   : > { %v1429_v19 = vpop.xlane.xlu2 %1428 }
 0x393   : > { %v1430_v36 = vcvt.f32.s32 %v1429_v19  ;;  %v1502_v19 = vshll.u32 %v1501_v25, 16 }
 0x395   : > { %v1433_v52 = vadd.s32 %v1432_v21, %v1430_v36  ;;  %v1460_v21 = vshll.u32 %v1459_v26, 16 }
 0x397   : > { %vm1631_vm5 = vcmp.eq.s32.totalorder %v3258_v0, %v1433_v52 }
 0x398   : > { %v3504_v9 = vsel %vm1631_vm5, 2147483648, %v3258_v0  ;;  %v3539_v0 = vsel %vm1632_vm6, 2147483648, %v3153_v50  ;;  %v688_v50 = vld [vmem:[%s4055_s5] sm:$0xff] }
 0x399   : > { %v1717_v60 = vshra.s32 %v3504_v9, 16  ;;  %v1730_v13 = vand.u32 65535, %v3539_v0 }
 0x39a   : > { %v1485_v6 = vpop.xlane.xlu2 %1484 }
 0x39b   : > { %v3507_v37 = vcvt.s32.f32 %v1717_v60  ;;  %v1486_v8 = vcvt.f32.s32 %v1485_v6  ;;  %v1473_v6 = vcvt.f32.s32 %v3428_v31 }
 0x39d   : > { %1720 = vmax.xlane.f32.xlu2 %v3507_v37  ;;  %v1489_v7 = vadd.s32 %v1488_v27, %v1486_v8  ;;  %v1474_v8 = vshll.u32 %v1473_v6, 16 }
 0x39f   : > { %vm1635_vm14 = vcmp.eq.s32.totalorder %v3180_v53, %v1489_v7 }
 0x3a0   : > { %v3552_v40 = vsel %vm1635_vm14, 2147483648, %v3180_v53 }
 0x3b2   : > { %v1415_v59 = vpop.xlane.xlu1 %1414 }
 0x3b3   : > { %v1416_v18 = vcvt.f32.s32 %v1415_v59 }
 0x3b5   : > { %v1419_v54 = vadd.s32 %v1418_v20, %v1416_v18  ;;  %v1773_v20 = vshra.s32 %v3552_v40, 16  ;;  %v1529_v18 = vcvt.f32.s32 %v3478_v42 }
 0x3b7   : > { %vm1630_vm9 = vcmp.eq.s32.totalorder %v3337_v12, %v1419_v54  ;;  %v1530_v25 = vshll.u32 %v1529_v18, 16 }
 0x3b8   : > { %v3520_v55 = vsel %vm1630_vm9, 2147483648, %v3337_v12  ;;  %vm3524_vm11 = vmpackc.low %vm1631_vm5, %vm1630_vm9  ;;  %v1499_v12 = vpop.xlane.xlu2 %1498 }
 0x3b9   : > { %v1703_v58 = vshra.s32 %v3520_v55, 16  ;;  %v1500_v10 = vcvt.f32.s32 %v1499_v12  ;;  %v3580_v12 = vcvt.s32.f32 %v1773_v20 }
 0x3ba   : > { %v3529_v28 = vpop.xlane.xlu1 %1620 }
 0x3bb   : > { %vm1622_vm12 = vcmp.eq.f32.partialorder %v3463_v46, %v3529_v28  ;;  %v3533_v14 = vcvt.s32.f32 %v1703_v58  ;;  %v1731_v46 = vshra.s32 %v3539_v0, 16  ;;  %v1503_v48 = vadd.s32 %v1502_v19, %v1500_v10  ;;  %v2515_v19 = vld [vmem:[%s4054_s4 + $0x10] sm:$0xff] }
 0x3bc   : > { %v1623_v32 = vsel %vm1622_vm12, %v1618_v49, -inf  ;;  %2358 = vmatmul.msk.bf16.gmra.mxu1 %vm545_vm0, %v2515_v19 }
 0x3bd   : > { %1624 = vmax.xlane.f32.xlu0 %v1623_v32  ;;  %1706 = vmax.xlane.f32.xlu1 %v3533_v14  ;;  %v3547_v60 = vcvt.s32.f32 %v1731_v46  ;;  %vm1636_vm15 = vcmp.eq.s32.totalorder %v3196_v39, %v1503_v48 }
 0x3be   : > { %v3587_v26 = vsel %vm1636_vm15, 2147483648, %v3196_v39  ;;  %v1543_v39 = vcvt.f32.s32 %v3435_v35 }
 0x3c0   : > { %v1569_v59 = vpop.xlane.xlu2 %1568 }
 0x3c1   : > { %v1570_v51 = vcvt.f32.s32 %v1569_v59 }
 0x3c2   : > { %v1457_v36 = vpop.xlane.xlu1 %1456  ;;  %v1513_v52 = vpop.xlane.xlu0 %1512 }
 0x3c3   : > { %v1458_v23 = vcvt.f32.s32 %v1457_v36  ;;  %v1514_v41 = vcvt.f32.s32 %v1513_v52  ;;  %v1573_v46 = vadd.s32 %v1572_v44, %v1570_v51  ;;  %v1787_v52 = vshra.s32 %v3587_v26, 16 }
 0x3c5   : > { %v3554_v56 = vadd.s32 %v1460_v21, %v1458_v23  ;;  %v1517_v22 = vadd.s32 %v1516_v43, %v1514_v41  ;;  %1734 = vmax.xlane.f32.xlu0 %v3547_v60  ;;  %v1585_v21 = vcvt.f32.s32 %v3482_v30  ;;  %vm1641_vm8 = vcmp.eq.s32.totalorder %v3236_v57, %v1573_v46 }
 0x3c6   : > { %v1544_v23 = vshll.u32 %v1543_v39, 16  ;;  %v3619_v59 = vcvt.s32.f32 %v1787_v52  ;;  %v3626_v7 = vsel %vm1641_vm8, 2147483648, %v3236_v57 }
 0x3c7   : > { %vm1633_vm3 = vcmp.eq.s32.totalorder %v3352_v45, %v3554_v56  ;;  %vm1637_vm4 = vcmp.eq.s32.totalorder %v3371_v34, %v1517_v22  ;;  %v1586_v30 = vshll.u32 %v1585_v21, 16 }
 0x3c8   : > { %v3569_v54 = vsel %vm1633_vm3, 2147483648, %v3352_v45  ;;  %vm3575_vm10 = vmpackc.low %vm1637_vm4, %vm1636_vm15  ;;  %v3594_v10 = vsel %vm1637_vm4, 2147483648, %v3371_v34  ;;  %v1611_v44 = vpop.xlane.xlu2 %1610  ;;  %v689_v45 = vld [vmem:[%s4055_s5 + $0x8] sm:$0xff] }
 0x3c9   : > { %v1745_v63 = vshra.s32 %v3569_v54, 16  ;;  %v1801_v34 = vshra.s32 %v3594_v10, 16 }
 0x3ca   : > { %v1471_v42 = vpop.xlane.xlu1 %1470  ;;  %v1527_v58 = vpop.xlane.xlu0 %1526 }
 0x3cb   : > { %v1472_v49 = vcvt.f32.s32 %v1471_v42  ;;  %v1528_v27 = vcvt.f32.s32 %v1527_v58  ;;  %v3582_v32 = vcvt.s32.f32 %v1745_v63  ;;  %v3621_v53 = vcvt.s32.f32 %v1801_v34 }
 0x3cc   : > { %v1557_v63 = vcvt.f32.s32 %v3442_v62  ;;  %v1857_v42 = vshra.s32 %v3626_v7, 16  ;;  %v1612_v62 = vcvt.f32.s32 %v1611_v44 }
 0x3cd   : > { %v1475_v3 = vadd.s32 %v1474_v8, %v1472_v49  ;;  %1776 = vmax.xlane.f32.xlu0 %v3580_v12  ;;  %1748 = vmax.xlane.f32.xlu1 %v3582_v32  ;;  %v1531_v36 = vadd.s32 %v1530_v25, %v1528_v27  ;;  %v1613_v8 = vcvt.f32.s32 %v3448_v1 }
 0x3ce   : > { %v1558_v25 = vshll.u32 %v1557_v63, 16 }
 0x3cf   : > { %vm1634_vm7 = vcmp.eq.s32.totalorder %v3275_v29, %v1475_v3  ;;  %vm1638_vm1 = vcmp.eq.s32.totalorder %v3384_v17, %v1531_v36  ;;  %v1614_v19 = vshll.u32 %v1613_v8, 16 }
 0x3d0   : > { %v3605_v43 = vsel %vm1634_vm7, 2147483648, %v3275_v29  ;;  %vm3610_vm13 = vmpackc.low %vm1635_vm14, %vm1634_vm7  ;;  %v3633_v51 = vsel %vm1638_vm1, 2147483648, %v3384_v17 }
 0x3d1   : > { %v1759_v35 = vshra.s32 %v3605_v43, 16  ;;  %v1815_v49 = vshra.s32 %v3633_v51, 16  ;;  %v1615_v36 = vadd.s32 %v1614_v19, %v1612_v62 }
 0x3d2   : > { %v1541_v41 = vpop.xlane.xlu1 %1540  ;;  %v1583_v22 = vpop.xlane.xlu0 %1582 }
 0x3d3   : > { %v1542_v29 = vcvt.f32.s32 %v1541_v41  ;;  %v1584_v47 = vcvt.f32.s32 %v1583_v22  ;;  %v3617_v6 = vcvt.s32.f32 %v1759_v35  ;;  %v3656_v52 = vcvt.s32.f32 %v1815_v49 }
 0x3d4   : > { %v1599_v35 = vcvt.f32.s32 %v3493_v5  ;;  %vm1644_vm15 = vcmp.eq.s32.totalorder %v3326_v33, %v1615_v36  ;;  %v1772_v41 = vand.u32 65535, %v3552_v40 }
 0x3d5   : > { %v1545_v20 = vadd.s32 %v1544_v23, %v1542_v29  ;;  %v1587_v18 = vadd.s32 %v1586_v30, %v1584_v47  ;;  %1762 = vmax.xlane.f32.xlu2 %v3617_v6  ;;  %1790 = vmax.xlane.f32.xlu0 %v3619_v59 }
 0x3d6   : > { %1804 = vmax.xlane.f32.xlu1 %v3621_v53  ;;  %v1600_v47 = vshll.u32 %v1599_v35, 16 }
 0x3d7   : > { %vm1639_vm2 = vcmp.eq.s32.totalorder %v3298_v16, %v1545_v20  ;;  %vm1642_vm9 = vcmp.eq.s32.totalorder %v3263_v11, %v1587_v18 }
 0x3d8   : > { %v3641_v58 = vsel %vm1639_vm2, 2147483648, %v3298_v16  ;;  %vm3646_vm5 = vmpackc.low %vm1639_vm2, %vm1638_vm1  ;;  %v3654_v16 = vcvt.s32.f32 %v1857_v42  ;;  %v3661_v17 = vsel %vm1642_vm9, 2147483648, %v3263_v11  ;;  %v1627_v11 = vcvt.f32.s32 %v3529_v28 }
 0x3d9   : > { %v1829_v1 = vshra.s32 %v3641_v58, 16  ;;  %v1871_v30 = vshra.s32 %v3661_v17, 16 }
 0x3da   : > { %v1555_v3 = vpop.xlane.xlu1 %1554 }
 0x3db   : > { %v1556_v21 = vcvt.f32.s32 %v1555_v3  ;;  %v3652_v39 = vcvt.s32.f32 %v1829_v1  ;;  %v3682_v63 = vcvt.s32.f32 %v1871_v30  ;;  %v1628_v1 = vshll.u32 %v1627_v11, 16 }
 0x3dc   : > { %v1856_v11 = vand.u32 65535, %v3626_v7 }
 0x3dd   : > { %v1559_v34 = vadd.s32 %v1558_v25, %v1556_v21  ;;  %1832 = vmax.xlane.f32.xlu2 %v3652_v39  ;;  %1860 = vmax.xlane.f32.xlu0 %v3654_v16 }
 0x3de   : > { %1818 = vmax.xlane.f32.xlu1 %v3656_v52 }
 0x3df   : > { %vm1640_vm12 = vcmp.eq.s32.totalorder %v3309_v2, %v1559_v34 }
 0x3e0   : > { %v3670_v23 = vsel %vm1640_vm12, 2147483648, %v3309_v2  ;;  %vm3674_vm14 = vmpackc.low %vm1641_vm8, %vm1640_vm12  ;;  %v3687_v2 = vsel %vm1644_vm15, 2147483648, %v3326_v33 }
 0x3e1   : > { %v1843_v22 = vshra.s32 %v3670_v23, 16  ;;  %v1899_v46 = vshra.s32 %v3687_v2, 16  ;;  %v1898_v31 = vand.u32 65535, %v3687_v2 }
 0x3e2   : > { %v1597_v29 = vpop.xlane.xlu1 %1596 }
 0x3e3   : > { %v1598_v5 = vcvt.f32.s32 %v1597_v29  ;;  %v3680_v20 = vcvt.s32.f32 %v1843_v22  ;;  %v3703_v49 = vcvt.s32.f32 %v1899_v46  ;;  %v1758_v22 = vand.u32 65535, %v3605_v43 }
 0x3e4   : > { %v1786_v29 = vand.u32 65535, %v3587_v26 }
 0x3e5   : > { %v1601_v57 = vadd.s32 %v1600_v47, %v1598_v5  ;;  %1846 = vmax.xlane.f32.xlu2 %v3680_v20  ;;  %1874 = vmax.xlane.f32.xlu0 %v3682_v63 }
 0x3e6   : > { %v1788_v46 = vcvt.s32.f32 %v1786_v29  ;;  %v1800_v29 = vand.u32 65535, %v3594_v10 }
 0x3e7   : > { %vm1643_vm4 = vcmp.eq.s32.totalorder %v3397_v4, %v1601_v57  ;;  %v1760_v57 = vcvt.s32.f32 %v1758_v22 }
 0x3e8   : > { %v3694_v44 = vsel %vm1643_vm4, 2147483648, %v3397_v4  ;;  %vm3698_vm7 = vmpackc.low %vm1643_vm4, %vm1642_vm9  ;;  %v2511_v4 = vld [vmem:[%s4083_s1 + $0x8] sm:$0xff] }
 0x3e9   : > { %v1885_v42 = vshra.s32 %v3694_v44, 16  ;;  %2342 = vmatmul.msk.bf16.gmra.mxu0 %vm545_vm0, %v2511_v4  ;;  %v1828_v4 = vand.u32 65535, %v3641_v58 }
 0x3eb   : > { %v3705_v62 = vcvt.s32.f32 %v1885_v42 }
 0x3ed   : > { %1902 = vmax.xlane.f32.xlu2 %v3703_v49  ;;  %1888 = vmax.xlane.f32.xlu1 %v3705_v62 }
 0x3fa   : > { %v3714_v19 = vpop.permute.xlu1 %666 }
 0x430   : > { %v1625_v18 = vpop.xlane.xlu0 %1624  ;;  %v3729_v30 = vpop.xlane.xlu1 %1706 }
 0x431   : > { %v1626_v25 = vcvt.f32.s32 %v1625_v18 }
 0x433   : > { %v1629_v3 = vadd.s32 %v1628_v1, %v1626_v25  ;;  %v1830_v1 = vcvt.s32.f32 %v1828_v4  ;;  %v1774_v25 = vcvt.s32.f32 %v1772_v41  ;;  %v3784_v4 = vpop.f32.mrf.mxu1  ;;  %v1814_v41 = vand.u32 65535, %v3633_v51 }
 0x435   : > { %vm1645_vm8 = vcmp.eq.s32.totalorder %v3458_v15, %v1629_v3  ;;  %v1858_v3 = vcvt.s32.f32 %v1856_v11 }
 0x436   : > { %v3718_v21 = vsel %vm1645_vm8, 2147483648, %v3458_v15  ;;  %vm2444_vm1 = vmpackc.low %vm1645_vm8, %vm1644_vm15  ;;  %v3734_v15 = vpop.xlane.xlu2 %1720 }
 0x437   : > { %2445 = vmatpush.bf16.xpose.msk.msrb.mxu1 %vm2444_vm1, %v2642_v38  ;;  %v1913_v34 = vshra.s32 %v3718_v21, 16  ;;  %vm2456_vm8 = vmpackc.low %vm1633_vm3, %vm1632_vm6  ;;  %vm1722_vm3 = vcmp.eq.f32.partialorder %v3507_v37, %v3734_v15  ;;  %v595_v37 = vld [vmem:[%s4053_s3] sm:$0xff] }
 0x438   : > { %v3724_v35 = vpop.xlane.xlu0 %1734 }
 0x439   : > { %v3726_v28 = vcvt.s32.f32 %v1913_v34  ;;  %vm1736_vm6 = vcmp.eq.f32.partialorder %v3547_v60, %v3724_v35 }
 0x43b   : > { %1916 = vmax.xlane.f32.xlu0 %v3726_v28 }
 0x43f   : > { %2447 = vmatpush.bf16.xpose.msk.msrb.mxu1 %vm3698_vm7, %v2642_v38 }
 0x440   : > { %v3736_v33 = vpop.xlane.xlu0 %1776  ;;  %v3738_v36 = vpop.xlane.xlu1 %1748 }
 0x441   : > { %vm1778_vm12 = vcmp.eq.f32.partialorder %v3580_v12, %v3736_v33  ;;  %v1842_v12 = vand.u32 65535, %v3670_v23 }
 0x442   : > { %v1779_v22 = vsel %vm1778_vm12, %v1774_v25, -inf  ;;  %v1816_v25 = vcvt.s32.f32 %v1814_v41 }
 0x447   : > { %2449 = vmatpush.bf16.xpose.msk.msrb.mxu1 %vm3674_vm14, %v2642_v38 }
 0x448   : > { %v3745_v47 = vpop.xlane.xlu2 %1762  ;;  %v3747_v5 = vpop.xlane.xlu0 %1790 }
 0x449   : > { %vm1764_vm2 = vcmp.eq.f32.partialorder %v3617_v6, %v3745_v47  ;;  %vm1792_vm9 = vcmp.eq.f32.partialorder %v3619_v59, %v3747_v5  ;;  %v3756_v18 = vpop.xlane.xlu1 %1804 }
 0x44a   : > { %v1765_v8 = vsel %vm1764_vm2, %v1760_v57, -inf  ;;  %v1793_v42 = vsel %vm1792_vm9, %v1788_v46, -inf  ;;  %v1844_v57 = vcvt.s32.f32 %v1842_v12  ;;  %v1802_v46 = vcvt.s32.f32 %v1800_v29 }
 0x44b   : > { %1766 = vmax.xlane.f32.xlu2 %v1765_v8  ;;  %1794 = vmax.xlane.f32.xlu1 %v1793_v42  ;;  %v1870_v29 = vand.u32 65535, %v3661_v17 }
 0x44f   : > { %2451 = vmatpush.bf16.xpose.msk.msrb.mxu1 %vm3646_vm5, %v2642_v38  ;;  %vm1806_vm5 = vcmp.eq.f32.partialorder %v3621_v53, %v3756_v18  ;;  %v1884_v53 = vand.u32 65535, %v3694_v44 }
 0x450   : > { %v3763_v6 = vpop.xlane.xlu2 %1832  ;;  %v3765_v59 = vpop.xlane.xlu0 %1860  ;;  %v1807_v42 = vsel %vm1806_vm5, %v1802_v46, -inf }
 0x451   : > { %vm1834_vm14 = vcmp.eq.f32.partialorder %v3652_v39, %v3763_v6  ;;  %vm1862_vm15 = vcmp.eq.f32.partialorder %v3654_v16, %v3765_v59  ;;  %v3778_v39 = vpop.xlane.xlu1 %1818 }
 0x452   : > { %v1835_v34 = vsel %vm1834_vm14, %v1830_v1, -inf  ;;  %v1863_v27 = vsel %vm1862_vm15, %v1858_v3, -inf  ;;  %v1900_v1 = vcvt.s32.f32 %v1898_v31  ;;  %v1886_v3 = vcvt.s32.f32 %v1884_v53 }
 0x453   : > { %1836 = vmax.xlane.f32.xlu0 %v1835_v34  ;;  %1780 = vmax.xlane.f32.xlu2 %v1779_v22  ;;  %v2512_v34 = vld [vmem:[%s4083_s1 + $0x10] sm:$0xff]  ;;  %v1716_v53 = vand.u32 65535, %v3504_v9 }
 0x454   : > { %1864 = vmax.xlane.f32.xlu1 %v1863_v27  ;;  %2343 = vmatmul.msk.bf16.gmra.mxu0 %vm545_vm0, %v2512_v34  ;;  %v3806_v27 = vpop.f32.mrf.mxu1 }
 0x457   : > { %2453 = vmatpush.bf16.xpose.msk.msrb.mxu1 %vm3575_vm10, %v2642_v38  ;;  %vm1820_vm10 = vcmp.eq.f32.partialorder %v3656_v52, %v3778_v39 }
 0x458   : > { %v3780_v16 = vpop.xlane.xlu2 %1846  ;;  %v1821_v22 = vsel %vm1820_vm10, %v1816_v25, -inf  ;;  %v3808_v12 = vpop.xlane.xlu0 %1874  ;;  %v1912_v25 = vand.u32 65535, %v3718_v21 }
 0x459   : > { %vm1848_vm4 = vcmp.eq.f32.partialorder %v3680_v20, %v3780_v16  ;;  %vm1876_vm1 = vcmp.eq.f32.partialorder %v3682_v63, %v3808_v12 }
 0x45a   : > { %v1849_v8 = vsel %vm1848_vm4, %v1844_v57, -inf }
 0x45b   : > { %1850 = vmax.xlane.f32.xlu0 %v1849_v8  ;;  %1808 = vmax.xlane.f32.xlu2 %v1807_v42  ;;  %v1732_v8 = vcvt.s32.f32 %v1730_v13  ;;  %v1744_v42 = vand.u32 65535, %v3569_v54  ;;  %v1839_v13 = vcvt.f32.s32 %v3763_v6 }
 0x45c   : > { %v3820_v57 = vpop.f32.mrf.mxu1 }
 0x45d   : > { %v1737_v31 = vsel %vm1736_vm6, %v1732_v8, -inf  ;;  %v1746_v41 = vcvt.s32.f32 %v1744_v42 }
 0x45f   : > { %2455 = vmatpush.bf16.xpose.msk.msrb.mxu1 %vm3610_vm13, %v2642_v38 }
 0x460   : > { %v3794_v20 = vpop.xlane.xlu2 %1902  ;;  %v3796_v11 = vpop.xlane.xlu1 %1888 }
 0x461   : > { %vm1904_vm7 = vcmp.eq.f32.partialorder %v3703_v49, %v3794_v20  ;;  %vm1890_vm13 = vcmp.eq.f32.partialorder %v3705_v62, %v3796_v11  ;;  %v1872_v49 = vcvt.s32.f32 %v1870_v29 }
 0x462   : > { %v1905_v48 = vsel %vm1904_vm7, %v1900_v1, -inf  ;;  %v1891_v52 = vsel %vm1890_vm13, %v1886_v3, -inf  ;;  %v1718_v3 = vcvt.s32.f32 %v1716_v53 }
 0x463   : > { %1906 = vmax.xlane.f32.xlu1 %v1905_v48  ;;  %1822 = vmax.xlane.f32.xlu2 %v1821_v22  ;;  %v1877_v62 = vsel %vm1876_vm1, %v1872_v49, -inf  ;;  %v1914_v48 = vcvt.s32.f32 %v1912_v25  ;;  %v1769_v22 = vcvt.f32.s32 %v3745_v47  ;;  %v2134_v47 = vld [vmem:[%s4059_s9 + $0x8] sm:$0xff] }
 0x464   : > { %1892 = vmax.xlane.f32.xlu0 %v1891_v52  ;;  %v661_v46 = vpop.f32.mrf.mxu1  ;;  %v1723_v60 = vsel %vm1722_vm3, %v1718_v3, -inf  ;;  %v1797_v52 = vcvt.f32.s32 %v3747_v5  ;;  %v596_v5 = vld [vmem:[%s4053_s3 + $0x8] sm:$0xff] }
 0x466   : > { %v569_v24 = vpop.f32.mrf.mxu0 }
 0x467   : > { %2457 = vmatpush.bf16.xpose.msk.msrb.mxu1 %vm2456_vm8, %v2642_v38 }
 0x46b   : > { %1878 = vmax.xlane.f32.xlu2 %v1877_v62  ;;  %v1770_v62 = vshll.u32 %v1769_v22, 16  ;;  %v2168_v22 = vld [vmem:[%s4061_s11] sm:$0xff] }
 0x46e   : > { %v571_v56 = vpop.f32.mrf.mxu0 }
 0x46f   : > { %2459 = vmatpush.bf16.xpose.msk.msrb.mxu1 %vm3524_vm11, %v2642_v38  ;;  %v3832_v63 = vpack.c.bf16 %v571_v56, %v569_v24  ;;  %vm1750_vm11 = vcmp.eq.f32.partialorder %v3582_v32, %v3738_v36 }
 0x470   : > { %v1751_v1 = vsel %vm1750_vm11, %v1746_v41, -inf  ;;  %v1840_v41 = vshll.u32 %v1839_v13, 16  ;;  %vm1708_vm11 = vcmp.eq.f32.partialorder %v3533_v14, %v3729_v30  ;;  %v1741_v14 = vcvt.f32.s32 %v3724_v35 }
 0x471   : > { %1990 = vmatmul.bf16.vlgmr.msrb.gmra.mxu0 %v3832_v63 }
 0x476   : > { %2006 = vmatmul.bf16.vlgmr.msrb.gmra.mxu1 %v3832_v63 }
 0x478   : > { %676 = vrot.lane.b32.xlu0 %v661_v46, %s2643_s28  ;;  %v1798_v46 = vshll.u32 %v1797_v52, 16 }
 0x47c   : > { %692 = vperm.xlu1 %2568, %v688_v50  }
 0x480   : > { %697 = vperm.xlu0 %2570, %v689_v45  }
 0x4a6   : > { %1738 = vmax.xlane.f32.xlu1 %v1737_v31 }
 0x4aa   : > { %1752 = vmax.xlane.f32.xlu0 %v1751_v1 }
 0x4ae   : > { %v3846_v34 = vpop.xlane.xlu0 %1916  ;;  %1724 = vmax.xlane.f32.xlu1 %v1723_v60  ;;  %v1811_v60 = vcvt.f32.s32 %v3756_v18 }
 0x4af   : > { %vm1918_vm2 = vcmp.eq.f32.partialorder %v3726_v28, %v3846_v34  ;;  %v1783_v28 = vcvt.f32.s32 %v3736_v33  ;;  %v1867_v33 = vcvt.f32.s32 %v3765_v59  ;;  %v2169_v59 = vld [vmem:[%s4061_s11 + $0x8] sm:$0xff] }
 0x4b0   : > { %v1919_v32 = vsel %vm1918_vm2, %v1914_v48, -inf  ;;  %v1853_v48 = vcvt.f32.s32 %v3780_v16 }
 0x4b1   : > { %1920 = vmax.xlane.f32.xlu2 %v1919_v32  ;;  %v1784_v31 = vshll.u32 %v1783_v28, 16  ;;  %v1868_v18 = vshll.u32 %v1867_v33, 16  ;;  %v1742_v33 = vshll.u32 %v1741_v14, 16 }
 0x4be   : > { %599 = vperm.xlu0 %2570, %v595_v37   ;;  %v1767_v29 = vpop.xlane.xlu2 %1766  ;;  %v1795_v49 = vpop.xlane.xlu1 %1794 }
 0x4bf   : > { %v1768_v50 = vcvt.f32.s32 %v1767_v29  ;;  %v1796_v45 = vcvt.f32.s32 %v1795_v49  ;;  %v1854_v29 = vshll.u32 %v1853_v48, 16 }
 0x4c1   : > { %v1771_v24 = vadd.s32 %v1770_v62, %v1768_v50  ;;  %v1799_v56 = vadd.s32 %v1798_v46, %v1796_v45  ;;  %v1825_v50 = vcvt.f32.s32 %v3778_v39  ;;  %v708_v45 = vld [vmem:[%s4057_s7 + $0x8] sm:$0xff] }
 0x4c3   : > { %vm1930_vm9 = vcmp.eq.s32.totalorder %v3605_v43, %v1771_v24  ;;  %vm1932_vm7 = vcmp.eq.s32.totalorder %v3587_v26, %v1799_v56  ;;  %v1826_v13 = vshll.u32 %v1825_v50, 16  ;;  %v2519_v24 = vld [vmem:[%s4058_s8 + $0x10] sm:$0xff] }
 0x4c6   : > { %2142 = vperm.xlu0 %2570, %v2134_v47   ;;  %v1781_v8 = vpop.xlane.xlu2 %1780  ;;  %v1837_v42 = vpop.xlane.xlu0 %1836 }
 0x4c7   : > { %v1782_v53 = vcvt.f32.s32 %v1781_v8  ;;  %v1838_v1 = vcvt.f32.s32 %v1837_v42  ;;  %604 = vperm.xlu1 %2568, %v596_v5   ;;  %v1865_v25 = vpop.xlane.xlu1 %1864  ;;  %v707_v42 = vld [vmem:[%s4057_s7] sm:$0xff] }
 0x4c8   : > { %v1866_v32 = vcvt.f32.s32 %v1865_v25 }
 0x4c9   : > { %v1785_v6 = vadd.s32 %v1784_v31, %v1782_v53  ;;  %v1841_v3 = vadd.s32 %v1840_v41, %v1838_v1  ;;  %674 = vrot.lane.b32.xlu2 %v3820_v57, %s2643_s28  ;;  %v1812_v57 = vshll.u32 %v1811_v60, 16  ;;  %v1755_v1 = vcvt.f32.s32 %v3738_v36  ;;  %v2572_v36 = vld [vmem:[%s4062_s12] ss:$0 sm:$0xff]  ;;  %s512_s28 = sand.u32 1, %s2630_s22  }
 0x4ca   : > { %v1869_v49 = vadd.s32 %v1868_v18, %v1866_v32  ;;  %s2326_s27 = sshll.u32 %s512_s28, 4  ;;  %s2245_s18 = scalar_lea.sflag [#allocation3], %s512_s28 }
 0x4cb   : > { %vm1931_vm12 = vcmp.eq.s32.totalorder %v3552_v40, %v1785_v6  ;;  %vm1935_vm1 = vcmp.eq.s32.totalorder %v3641_v58, %v1841_v3  ;;  %v1756_v48 = vshll.u32 %v1755_v1, 16  ;;  %s514_s21 = scalar_lea.vmem [#allocation2], %s2326_s27 }
 0x4cc   : > { %vm3876_vm14 = vmpackc.low %vm1931_vm12, %vm1930_vm9  ;;  %vm1937_vm5 = vcmp.eq.s32.totalorder %v3626_v7, %v1869_v49  ;;  %v1702_v7 = vand.u32 65535, %v3520_v55  ;;  %s2257_s25 = sshll.u32 %s514_s21, 4  ;;  %s2258_s25 = int_to_ptr.vmem [resolvable:$true] %s2257_s25 }
 0x4ce   : > { %2172 = vperm.xlu0 %2570, %v2168_v22   ;;  %v1851_v16 = vpop.xlane.xlu0 %1850  ;;  %v1809_v37 = vpop.xlane.xlu2 %1808  ;;  %v1704_v26 = vcvt.s32.f32 %v1702_v7 }
 0x4cf   : > { %v1852_v62 = vcvt.f32.s32 %v1851_v16  ;;  %v1810_v46 = vcvt.f32.s32 %v1809_v37  ;;  %2177 = vperm.xlu1 %2568, %v2169_v59   ;;  %v673_v37 = vmul.f32 %v2572_v36, %v3714_v19 }
 0x4d1   : > { %v1855_v43 = vadd.s32 %v1854_v29, %v1852_v62  ;;  %v1813_v40 = vadd.s32 %v1812_v57, %v1810_v46  ;;  %v574_v3 = vpop.f32.mrf.mxu0  ;;  %v2573_v57 = vld [vmem:[%s4063_s13] ss:$0 sm:$0xff]  ;;  %v685_v49 = vadd.f32 %v673_v37, %v3806_v27  ;;  %v1909_v62 = vcvt.f32.s32 %v3794_v20 }
 0x4d2   : > { %v1881_v27 = vcvt.f32.s32 %v3808_v12  ;;  %v2516_v12 = vld [vmem:[%s4056_s6] sm:$0xff] }
 0x4d3   : > { %vm1936_vm15 = vcmp.eq.s32.totalorder %v3670_v23, %v1855_v43  ;;  %vm1933_vm4 = vcmp.eq.s32.totalorder %v3594_v10, %v1813_v40  ;;  %v1709_v23 = vsel %vm1708_vm11, %v1704_v26, -inf  ;;  %v1910_v19 = vshll.u32 %v1909_v62, 16 }
 0x4d4   : > { %vm3887_vm10 = vmpackc.low %vm1937_vm5, %vm1936_vm15  ;;  %v1713_v10 = vcvt.f32.s32 %v3729_v30 }
 0x4d5   : > { %vm3892_vm13 = vmpackc.low %vm1933_vm4, %vm1932_vm7 }
 0x4d6   : > { %716 = vperm.xlu0 %2570, %v708_v45   ;;  %v1823_v39 = vpop.xlane.xlu2 %1822  ;;  %v1907_v8 = vpop.xlane.xlu1 %1906  ;;  %v1714_v28 = vshll.u32 %v1713_v10, 16 }
 0x4d7   : > { %v1824_v47 = vcvt.f32.s32 %v1823_v39  ;;  %v3905_v56 = vpop.xlane.xlu0 %1892 }
 0x4d9   : > { %v1827_v5 = vadd.s32 %v1826_v13, %v1824_v47  ;;  %v576_v16 = vpop.f32.mrf.mxu0  ;;  %v1908_v13 = vcvt.f32.s32 %v1907_v8  ;;  %v1894_v8 = vcvt.f32.s32 %v3905_v56 }
 0x4db   : > { %vm1934_vm8 = vcmp.eq.s32.totalorder %v3633_v51, %v1827_v5  ;;  %v2133_v51 = vld [vmem:[%s4059_s9] sm:$0xff]  ;;  %v1911_v20 = vadd.s32 %v1910_v19, %v1908_v13 }
 0x4dc   : > { %vm3898_vm6 = vmpackc.low %vm1935_vm1, %vm1934_vm8 }
 0x4dd   : > { %vm1940_vm15 = vcmp.eq.s32.totalorder %v3687_v2, %v1911_v20 }
 0x4de   : > { %v1879_v6 = vpop.xlane.xlu2 %1878 }
 0x4df   : > { %v1880_v14 = vcvt.f32.s32 %v1879_v6 }
 0x4ea   : > { %v677_v58 = vpop.permute.xlu0 %676 }
 0x4eb   : > { %v683_v29 = vmul.f32 %v2573_v57, %v677_v58 }
 0x4ed   : > { %v687_v50 = vadd.f32 %v685_v49, %v683_v29 }
 0x4ee   : > { %v693_v31 = vpop.permute.xlu1 %692 }
 0x4f2   : > { %1710 = vmax.xlane.f32.xlu2 %v1709_v23  ;;  %v698_v41 = vpop.permute.xlu0 %697 }
 0x4f3   : > { %v701_v47 = vadd.f32 %v698_v41, %v687_v50 }
 0x4f5   : > { %v703_v58 = vmax.f32 %v701_v47, 0.0 }
 0x50a   : > { %2137 = vperm.xlu2 %2569, %v2133_v51   ;;  %v1895_v51 = vcvt.f32.s32 %v3796_v11 }
 0x512   : > { %711 = vperm.xlu2 %2569, %v707_v42  }
 0x519   : > { %v1739_v53 = vpop.xlane.xlu1 %1738 }
 0x51a   : > { %v1740_v25 = vcvt.f32.s32 %v1739_v53  ;;  %v1882_v53 = vshll.u32 %v1881_v27, 16 }
 0x51c   : > { %v1743_v32 = vadd.s32 %v1742_v33, %v1740_v25  ;;  %v1883_v11 = vadd.s32 %v1882_v53, %v1880_v14 }
 0x51d   : > { %v1753_v60 = vpop.xlane.xlu0 %1752 }
 0x51e   : > { %v1754_v22 = vcvt.f32.s32 %v1753_v60  ;;  %vm1928_vm3 = vcmp.eq.s32.totalorder %v3539_v0, %v1743_v32  ;;  %v672_v0 = vmul.f32 %v2572_v36, %v3416_v61  ;;  %v1991_v61 = vpop.f32.mrf.mxu0  ;;  %vm1938_vm4 = vcmp.eq.s32.totalorder %v3661_v17, %v1883_v11  ;;  %v2518_v17 = vld [vmem:[%s4058_s8 + $0x8] sm:$0xff] }
 0x520   : > { %v1757_v59 = vadd.s32 %v1756_v48, %v1754_v22  ;;  %v684_v40 = vadd.f32 %v672_v0, %v3784_v4 }
 0x521   : > { %v3933_v26 = vpop.xlane.xlu1 %1724 }
 0x522   : > { %vm1929_vm2 = vcmp.eq.s32.totalorder %v3569_v54, %v1757_v59  ;;  %v1923_v54 = vcvt.f32.s32 %v3846_v34  ;;  %v2007_v34 = vpop.f32.mrf.mxu1  ;;  %v1726_v37 = vcvt.f32.s32 %v3933_v26 }
 0x523   : > { %vm3917_vm9 = vmpackc.low %vm1929_vm2, %vm1928_vm3 }
 0x524   : > { %v1921_v35 = vpop.xlane.xlu2 %1920  ;;  %v1924_v39 = vshll.u32 %v1923_v54, 16 }
 0x525   : > { %v1922_v46 = vcvt.f32.s32 %v1921_v35 }
 0x526   : > { %v1993_v25 = vpop.f32.mrf.mxu0 }
 0x527   : > { %v1925_v7 = vadd.s32 %v1924_v39, %v1922_v46 }
 0x529   : > { %vm1941_vm12 = vcmp.eq.s32.totalorder %v3718_v21, %v1925_v7 }
 0x52a   : > { %vm2460_vm5 = vmpackc.low %vm1941_vm12, %vm1940_vm15  ;;  %v2009_v56 = vpop.f32.mrf.mxu1 }
 0x52c   : > { %v675_v43 = vpop.permute.xlu2 %674 }
 0x52d   : > { %v682_v45 = vmul.f32 %v2573_v57, %v675_v43 }
 0x52f   : > { %v686_v5 = vadd.f32 %v684_v40, %v682_v45 }
 0x530   : > { %v600_v4 = vpop.permute.xlu0 %599 }
 0x531   : > { %v700_v23 = vadd.f32 %v693_v31, %v686_v5  ;;  %v3939_v1 = vadd.f32 %v600_v4, %v574_v3  ;;  %v1896_v31 = vshll.u32 %v1895_v51, 16  ;;  %v2520_v51 = vld [vmem:[%s4060_s10] sm:$0xff] }
 0x533   : > { %v702_v42 = vmax.f32 %v700_v23, 0.0  ;;  %v1897_v21 = vadd.s32 %v1896_v31, %v1894_v8  ;;  %v1992_v6 = vadd.f32 %v1991_v61, %v3939_v1  ;;  %v2008_v3 = vadd.f32 %v2007_v34, %v3939_v1 }
 0x535   : > { %v706_v41 = vpack.c.bf16 %v703_v58, %v702_v42  ;;  %vm1939_vm7 = vcmp.eq.s32.totalorder %v3694_v44, %v1897_v21  ;;  %v1996_v32 = vmax.f32 %v1992_v6, 0.0  ;;  %v2012_v22 = vmax.f32 %v2008_v3, 0.0 }
 0x536   : > { %vm2462_vm8 = vmpackc.low %vm1939_vm7, %vm1938_vm4  ;;  %v1727_v44 = vcvt.f32.s32 %v3734_v15 }
 0x537   : > { %734 = vmatpush.bf16.msra.mxu2 %v706_v41 }
 0x538   : > { %v1728_v0 = vshll.u32 %v1727_v44, 16 }
 0x539   : > { %v605_v33 = vpop.permute.xlu1 %604 }
 0x53a   : > { %v3948_v60 = vadd.f32 %v605_v33, %v576_v16  ;;  %2363 = vmatmul.msk.bf16.vlgmr.msra.gmra.mxu2 %vm545_vm0, %v2516_v12  ;;  %v3959_v16 = vld [vmem:[%s4058_s8] sm:$0xff]  ;;  %v1729_v15 = vadd.s32 %v1728_v0, %v1726_v37 }
 0x53b   : > { %2461 = vmatpush.bf16.xpose.msk.msrb.mxu2 %vm2460_vm5, %v2642_v38 }
 0x53c   : > { %v1994_v2 = vadd.f32 %v1993_v25, %v3948_v60  ;;  %v2010_v48 = vadd.f32 %v2009_v56, %v3948_v60 }
 0x53e   : > { %v1997_v59 = vmax.f32 %v1994_v2, 0.0  ;;  %v2013_v35 = vmax.f32 %v2010_v48, 0.0 }
 0x540   : > { %v2030_v36 = vpack.c.bf16 %v1997_v59, %v1996_v32  ;;  %v2031_v57 = vpack.c.bf16 %v2013_v35, %v2012_v22 }
 0x542   : > { %2070 = vmatpush.bf16.msra.mxu0 %v2030_v36  ;;  %2092 = vmatpush.bf16.msra.mxu1 %v2031_v57 }
 0x543   : > { %2463 = vmatpush.bf16.xpose.msk.msrb.mxu2 %vm2462_vm8, %v2642_v38 }
 0x545   : > { %2491 = vmatmul.msk.bf16.vlgmr.msra.gmra.mxu1 %vm545_vm0, %v3959_v16  ;;  %2488 = vmatmul.msk.bf16.vlgmr.msra.gmra.mxu0 %vm545_vm0, %v3959_v16 }
 0x54b   : > { %2465 = vmatpush.bf16.xpose.msk.msrb.mxu2 %vm3887_vm10, %v2642_v38  ;;  %vm1927_vm10 = vcmp.eq.s32.totalorder %v3504_v9, %v1729_v15 }
 0x553   : > { %2467 = vmatpush.bf16.xpose.msk.msrb.mxu2 %vm3898_vm6, %v2642_v38 }
 0x555   : > { %2492 = vmatmul.msk.bf16.gmra.mxu1 %vm545_vm0, %v2518_v17  ;;  %2489 = vmatmul.msk.bf16.gmra.mxu0 %vm545_vm0, %v2518_v17 }
 0x55b   : > { %2469 = vmatpush.bf16.xpose.msk.msrb.mxu2 %vm3892_vm13, %v2642_v38 }
 0x563   : > { %2471 = vmatpush.bf16.xpose.msk.msrb.mxu2 %vm3876_vm14, %v2642_v38 }
 0x565   : > { %v1711_v29 = vpop.xlane.xlu2 %1710  ;;  %2493 = vmatmul.msk.bf16.gmra.mxu1 %vm545_vm0, %v2519_v24  ;;  %2490 = vmatmul.msk.bf16.gmra.mxu0 %vm545_vm0, %v2519_v24 }
 0x566   : > { %v1712_v54 = vcvt.f32.s32 %v1711_v29  ;;  %v2574_v29 = vld [vmem:[%s2790_s17] sm:$0xff] }
 0x568   : > { %v1715_v49 = vadd.s32 %v1714_v28, %v1712_v54  ;;  %v2234_v28 = vmul.f32 2.0, %v2574_v29 }
 0x56a   : > { %vm1926_vm14 = vcmp.eq.s32.totalorder %v3520_v55, %v1715_v49 }
 0x56b   : > { %2473 = vmatpush.bf16.xpose.msk.msrb.mxu2 %vm3917_vm9, %v2642_v38  ;;  %vm2474_vm13 = vmpackc.low %vm1927_vm10, %vm1926_vm14 }
 0x56d   : > { %v2138_v9 = vpop.permute.xlu2 %2137 }
 0x573   : > { %2475 = vmatpush.bf16.xpose.msk.msrb.mxu2 %vm2474_vm13, %v2642_v38 }
 0x575   : > { %v712_v10 = vpop.permute.xlu2 %711 }
 0x57a   : > { %2022 = vmatmul.bf16.vlgmr.msrb.gmra.mxu2 %v3832_v63  ;;  %v2143_v63 = vpop.permute.xlu0 %2142 }
 0x582   : > { %v2173_v44 = vpop.permute.xlu0 %2172 }
 0x5bd   : > { %v736_v5 = vpop.f32.mrf.mxu2 }
 0x5be   : > { %v737_v0 = vadd.f32 %v736_v5, %v712_v10 }
 0x5c2   : > { %v2094_v30 = vpop.f32.mrf.mxu1  ;;  %v2072_v52 = vpop.f32.mrf.mxu0 }
 0x5c5   : > { %v3997_v20 = vpop.f32.mrf.mxu2 }
 0x5ca   : > { %v2096_v62 = vpop.f32.mrf.mxu1  ;;  %v2074_v46 = vpop.f32.mrf.mxu0 }
 0x5d2   : > { %v2099_v43 = vpop.f32.mrf.mxu1  ;;  %v2077_v40 = vpop.f32.mrf.mxu0 }
 0x5d3   : > { %v2149_v50 = vadd.f32 %v2099_v43, %v2072_v52  ;;  %v2236_v52 = vadd.f32 %v2234_v28, %v737_v0  ;;  %v2178_v43 = vpop.permute.xlu1 %2177 }
 0x5da   : > { %v2101_v45 = vpop.f32.mrf.mxu1  ;;  %v2079_v39 = vpop.f32.mrf.mxu0 }
 0x5db   : > { %v2150_v18 = vadd.f32 %v2101_v45, %v2074_v46  ;;  %v2575_v45 = vld [vmem:[%s2790_s17 + $0x8] sm:$0xff]  ;;  %s2259_s17 = sshll.u32 %s2256_s29, 4  ;;  %s2260_s17 = int_to_ptr.hbm [resolvable:$true] %s2259_s17 }
 0x5dc   : > { %s2590_s19 = sshra.s32 %s2260_s17, 4  ;;  %s2591_s19 = int_to_ptr.hbm [resolvable:$true] %s2590_s19 }
 0x5dd   : > { %s2592_s23 = scalar_lea.hbm %s2591_s19, 16  ;;  %p2597_p0 = scmp.lt.s32.totalorder %s2591_s19, %s4066_s16 }
 0x5de   : > { %p2593_p11 = scmp.ne.s32.totalorder %s2591_s19, %s2592_s23  ;;  %p2598_p1 = scmp.lt.s32.totalorder %s2596_s20, %s2592_s23 }
 0x5e0   : > { %p2594_p12 = pnand %p2593_p11, %p2769_p5  ;;  %p2599_p2 = por %p2598_p1, %p2597_p0 }
 0x5e2   : > { %v2104_v13 = vpop.f32.mrf.mxu1  ;;  %v2082_v47 = vpop.f32.mrf.mxu0  ;;  %p2595_p13 = pneg %p2594_p12 }
 0x5e3   : > { %v2131_v55 = vadd.f32 %v2104_v13, %v2077_v40  ;;  %v717_v40 = vpop.permute.xlu0 %716 }
 0x5e4   : > { %v739_v47 = vadd.f32 %v3997_v20, %v717_v40  ;;  %p2600_p3 = pnand %p2599_p2, %p2595_p13 }
 0x5e5   : > { %v2145_v38 = vadd.f32 %v2138_v9, %v2131_v55 }
 0x5e7   : > { %v2147_v34 = vmax.f32 %v2145_v38, 0.0 }
 0x5ea   : > { %v2106_v19 = vpop.f32.mrf.mxu1  ;;  %v2083_v7 = vpop.f32.mrf.mxu0 }
 0x5eb   : > { %v2132_v61 = vadd.f32 %v2106_v19, %v2079_v39  ;;  %v2235_v39 = vmul.f32 2.0, %v2575_v45 }
 0x5ed   : > { %v2146_v26 = vadd.f32 %v2143_v63, %v2132_v61  ;;  %v2237_v38 = vadd.f32 %v2235_v39, %v739_v47 }
 0x5ef   : > { %v2148_v23 = vmax.f32 %v2146_v26, 0.0 }
 0x5f1   : > { %v2163_v27 = vpack.c.bf16 %v2148_v23, %v2147_v34 }
 0x5f3   : > { %2195 = vmatpush.bf16.msrb.mxu0 %v2163_v27 }
 0x5f6   : > { %2501 = vmatmul.msk.bf16.vlgmr.msrb.gmra.mxu0 %vm545_vm0, %v2520_v51 }
 0x5fd   : > { %v2023_v58 = vpop.f32.mrf.mxu2 }
 0x5fe   : > { %v2024_v4 = vadd.f32 %v2023_v58, %v3939_v1 }
 0x600   : > { %v2028_v8 = vmax.f32 %v2024_v4, 0.0 }
 0x605   : > { %v2025_v42 = vpop.f32.mrf.mxu2 }
 0x606   : > { %v2026_v14 = vadd.f32 %v2025_v42, %v3948_v60 }
 0x608   : > { %v2029_v41 = vmax.f32 %v2026_v14, 0.0 }
 0x60a   : > { %v2032_v53 = vpack.c.bf16 %v2029_v41, %v2028_v8 }
 0x60c   : > { %2116 = vmatpush.bf16.msra.mxu2 %v2032_v53 }
 0x60f   : > { %2494 = vmatmul.msk.bf16.vlgmr.msra.gmra.mxu2 %vm545_vm0, %v3959_v16 }
 0x61f   : > { %2495 = vmatmul.msk.bf16.gmra.mxu2 %vm545_vm0, %v2518_v17 }
 0x62f   : > { %2496 = vmatmul.msk.bf16.gmra.mxu2 %vm545_vm0, %v2519_v24 }
 0x673   : > { %v2197_v17 = vpop.f32.mrf.mxu0 }
 0x674   : > { %v2198_v15 = vadd.f32 %v2197_v17, %v2173_v44 }
 0x67b   : > { %v2199_v46 = vpop.f32.mrf.mxu0 }
 0x67c   : > { %v2200_v55 = vadd.f32 %v2199_v46, %v2178_v43 }
 0x692   : > { %v2118_v12 = vpop.f32.mrf.mxu2 }
 0x69a   : > { %v2119_v31 = vpop.f32.mrf.mxu2 }
 0x6a2   : > { %v2121_v11 = vpop.f32.mrf.mxu2 }
 0x6a3   : > { %v2157_v25 = vadd.f32 %v2121_v11, %v2094_v30 }
 0x6a5   : > { %v2159_v1 = vadd.f32 %v2157_v25, %v2138_v9 }
 0x6a7   : > { %v2161_v6 = vmax.f32 %v2159_v1, 0.0 }
 0x6aa   : > { %v2123_v21 = vpop.f32.mrf.mxu2 }
 0x6ab   : > { %v2158_v33 = vadd.f32 %v2123_v21, %v2096_v62 }
 0x6ad   : > { %v2160_v56 = vadd.f32 %v2158_v33, %v2143_v63 }
 0x6af   : > { %v2162_v3 = vmax.f32 %v2160_v56, 0.0 }
 0x6b1   : > { %v2165_v60 = vpack.c.bf16 %v2162_v3, %v2161_v6 }
 0x6b2   : > { %v2126_v2 = vpop.f32.mrf.mxu2 }
 0x6b3   : > { %2223 = vmatpush.bf16.msrb.mxu2 %v2165_v60  ;;  %v2151_v48 = vadd.f32 %v2149_v50, %v2126_v2 }
 0x6b5   : > { %v2153_v22 = vadd.f32 %v2151_v48, %v2138_v9 }
 0x6b6   : > { %2503 = vmatmul.msk.bf16.vlgmr.msrb.gmra.mxu2 %vm545_vm0, %v2520_v51 }
 0x6b7   : > { %v2155_v36 = vmax.f32 %v2153_v22, 0.0 }
 0x6ba   : > { %v2128_v32 = vpop.f32.mrf.mxu2 }
 0x6bb   : > { %v2152_v59 = vadd.f32 %v2150_v18, %v2128_v32 }
 0x6bd   : > { %v2154_v35 = vadd.f32 %v2152_v59, %v2143_v63 }
 0x6bf   : > { %v2156_v57 = vmax.f32 %v2154_v35, 0.0 }
 0x6c1   : > { %v2164_v16 = vpack.c.bf16 %v2156_v57, %v2155_v36 }
 0x6c3   : > { %2209 = vmatpush.bf16.msrb.mxu1 %v2164_v16 }
 0x6c6   : > { %2502 = vmatmul.msk.bf16.vlgmr.msrb.gmra.mxu1 %vm545_vm0, %v2520_v51 }
 0x739   : > { %v2225_v24 = vpop.f32.mrf.mxu2 }
 0x73a   : > { %v2226_v49 = vadd.f32 %v2225_v24, %v2173_v44 }
 0x741   : > { %v2227_v18 = vpop.f32.mrf.mxu2 }
 0x742   : > { %v2228_v19 = vadd.f32 %v2227_v18, %v2178_v43 }
 0x743   : > { %v2211_v37 = vpop.f32.mrf.mxu1 }
 0x744   : > { %v2212_v54 = vadd.f32 %v2211_v37, %v2173_v44 }
 0x746   : > { %v2230_v30 = vmax.f32 %v2198_v15, %v2212_v54 }
 0x748   : > { %v2232_v62 = vmax.f32 %v2230_v30, %v2226_v49 }
 0x74a   : > { %v2238_v50 = vadd.f32 %v2236_v52, %v2232_v62 }
 0x74b   : > { %v2213_v13 = vpop.f32.mrf.mxu1 }
 0x74c   : > { %v2240_v5 = vmax.f32 %v2238_v50, 0.0  ;;  %v2214_v9 = vadd.f32 %v2213_v13, %v2178_v43 }
 0x74e   : > { %2242 = vst [vmem:[%s514_s21] sm:$0xff] %v2240_v5  ;;  %v2231_v7 = vmax.f32 %v2200_v55, %v2214_v9 }
 0x750   : > { %v2233_v61 = vmax.f32 %v2231_v7, %v2228_v19 }
 0x752   : > { %v2239_v63 = vadd.f32 %v2237_v38, %v2233_v61 }
 0x754   : > { %v2241_v26 = vmax.f32 %v2239_v63, 0.0 }
 0x756   : > { %2243 = vst [vmem:[%s514_s21 + $0x8] sm:$0xff] %v2241_v26 }
 0x757   : > { %2603 = shalt.err (!%p2600_p3)
}
 0x758   : > { %s2644_s28 = smov 128   ;;  %s2645_s21 = smov 8  }
 0x759   : > { %2522 = dma.vmem_to_hbm [thread:$0]  (%p2769_p5), %s2258_s25, 256, %s2260_s17, %s2245_s18, %s2644_s28, %s2644_s28, %s2645_s21  }
 0x75a PF: > { %s4119_s1 = sld [smem:[#allocation5_spill]]  ;;  %p2528_p4 = scmp.ge.s32.totalorder %s2638_s24, 2 }
 0x75c   : > { %p2525_p7 = pnand %p2528_p4, %p2773_p6 }
 0x75e   : > { %p2526_p8 = pneg %p2525_p7 }
 0x760   : > { %s2274_s27 = sand.u32 1, %s4119_s1  }
 0x761   : > { %s2275_s30 = scalar_lea.sflag [#allocation3], %s2274_s27 }
 0x762   : > { %2621 = dma.done.wait (%p2526_p8), %s2275_s30, 256  }
 0x763   : > { %2623 = vsyncadd (%p2526_p8), %s2275_s30, 4294967040  ;;  %s4121_s24 = sld [smem:[#allocation7_spill]]  ;;  %s4124_s21 = smov %s2630_s22 }
 0x764   : > { %s4122_s19 = sld [smem:[#allocation6_spill]] }
 0x765   : > { %s4123_s23 = sld [smem:[#allocation8_spill]] }
 0x769   : > { %p26_p9 = scmp.ge.s32.totalorder %s4121_s24, 4  }
 0x76a   : > { %s4125_s22 = smov %s4122_s19 }
 0x76b   :  { %28 = sbr.rel (!%p26_p9) target bundleno = 7 (0x7), region = 119 }
 0x770   :  { %2281 = vsyncpa [#allocation3], 1 }
 0x771   :  { %2283 = vsyncpa [#allocation3 + $0x1], 1 }

</bundles_post_ra>
